<compile_context>
chip_gen: v5e
topology: v5e:2x2
jax: 0.10.0
libtpu: 0.0.40
codegen_flags: <defaults>
</compile_context>

<pallas_src>
import jax
import jax.numpy as jnp
from jax import lax
from jax.experimental import pallas as pl
from jax.experimental.pallas import tpu as pltpu

_BN_EPS = 1e-5


# ------------------------------ Pallas kernels --------------------------------

def _conv3x3_rows_kernel(*refs):
    """Fused 3x3 conv (stride 1, pad 1) + folded-BN bias + ReLU.

    refs = (x_0..x_{T-1}, w_0..w_{T-1}, bias, out), T in {1, 2}:
      x_t  : (1, H+2, W*Cin_t)     bf16, H-padded, lanes pack (x, ci)
      w_t  : (3, W*Cin_t, W*Cout)  bf16, banded weights, one slab per dy tap
      bias : (1, W*Cout)           f32, folded BN bias replicated over x
      out  : (1, H, W*Cout)        bf16
    T == 2 is the fused skip-concat path (decoder convs): both operands
    accumulate into the same f32 accumulator, no HBM concat.
    """
    t = (len(refs) - 2) // 2
    x_refs, w_refs = refs[:t], refs[t:2 * t]
    b_ref, o_ref = refs[2 * t], refs[2 * t + 1]
    h = o_ref.shape[1]

    acc = None
    for i in range(t):
        x = x_refs[i][0]                                   # (h+2, W*Cin_i) bf16
        for dy in range(3):
            # Full-height bf16 MXU matmul, then an f32 row-offset slice picks
            # the dy-shifted window (keeps the bf16 operands un-sliced).
            full = jnp.dot(x, w_refs[i][dy],
                           preferred_element_type=jnp.float32)   # (h+2, WN) f32
            term = full[dy:dy + h, :]
            acc = term if acc is None else acc + term
    o_ref[0] = jnp.maximum(acc + b_ref[...], 0.0).astype(o_ref.dtype)


def _matmul_bias_relu_kernel(x_ref, w_ref, b_ref, o_ref):
    """relu(x @ w + bias): single-dot path for 2x2/s2 conv and 2x2/s2 deconv."""
    acc = jnp.dot(x_ref[0], w_ref[...], preferred_element_type=jnp.float32)
    o_ref[0] = jnp.maximum(acc + b_ref[...], 0.0).astype(o_ref.dtype)


# ------------------------------ pallas_call wrappers ---------------------------

def _compiler_params():
    # batch axis parallel -> v7x's two TensorCores split the images.
    return pltpu.CompilerParams(dimension_semantics=("parallel",))


def _conv3x3_call(x_list, wband_list, bias_row):
    n = x_list[0].shape[0]
    h = x_list[0].shape[1] - 2
    wn = wband_list[0].shape[2]
    in_specs = (
        [pl.BlockSpec((1, xp.shape[1], xp.shape[2]), lambda b: (b, 0, 0))
         for xp in x_list]
        + [pl.BlockSpec(wb.shape, lambda b: (0, 0, 0)) for wb in wband_list]
        + [pl.BlockSpec(bias_row.shape, lambda b: (0, 0))])
    return pl.pallas_call(
        _conv3x3_rows_kernel,
        out_shape=jax.ShapeDtypeStruct((n, h, wn), jnp.bfloat16),
        grid_spec=pltpu.PrefetchScalarGridSpec(
            num_scalar_prefetch=0,
            grid=(n,),
            in_specs=in_specs,
            out_specs=pl.BlockSpec((1, h, wn), lambda b: (b, 0, 0))),
        compiler_params=_compiler_params(),
    )(*x_list, *wband_list, bias_row)


def _matmul_rows_call(x, wpack, bias_row):
    n, r, k = x.shape
    wn = wpack.shape[1]
    return pl.pallas_call(
        _matmul_bias_relu_kernel,
        out_shape=jax.ShapeDtypeStruct((n, r, wn), jnp.bfloat16),
        grid_spec=pltpu.PrefetchScalarGridSpec(
            num_scalar_prefetch=0,
            grid=(n,),
            in_specs=[pl.BlockSpec((1, r, k), lambda b: (b, 0, 0)),
                      pl.BlockSpec((k, wn), lambda b: (0, 0)),
                      pl.BlockSpec((1, wn), lambda b: (0, 0))],
            out_specs=pl.BlockSpec((1, r, wn), lambda b: (b, 0, 0))),
        compiler_params=_compiler_params(),
    )(x, wpack, bias_row)


# ------------------------------ fused layer wrappers ---------------------------

def conv3x3_bn_relu(x_list, wband_list, bias_row):
    # Only glue left outside the kernel: one zero row of padding top/bottom
    # (replaces the previous 9x-wide im2col HBM pass).
    xp = [jnp.pad(x, ((0, 0), (1, 1), (0, 0))) for x in x_list]
    return _conv3x3_call(xp, wband_list, bias_row)


def conv2x2s2_bn_relu(x, wpack, bias_row):
    n, h, wc = x.shape
    # stride-2 rows handled by a free reshape: (n, h, W*C) -> (n, h/2, 2*W*C)
    return _matmul_rows_call(x.reshape(n, h // 2, 2 * wc), wpack, bias_row)


def deconv2x2s2_bn_relu(x, wpack, bias_row):
    n, h, _ = x.shape
    y = _matmul_rows_call(x, wpack, bias_row)      # (n, h, 2 * Wo * Cout)
    return y.reshape(n, 2 * h, y.shape[2] // 2)    # free reshape: interleave dy rows


# ------------------------------ one-time weight packing ------------------------

def _fold_bn(p):
    scale = p["gamma"] / jnp.sqrt(p["var"] + _BN_EPS)
    bias = scale * (p["b"] - p["mean"]) + p["beta"]
    return scale, bias


def _pack_conv3x3(p, width, cin_range=None):
    """Banded weights for Conv2d(3,1,1): (3, W*Cin, W*Cout) bf16 + (1, W*Cout) f32."""
    scale, bias = _fold_bn(p)
    wgt = p["w"] * scale[:, None, None, None]          # (Cout, Cin, 3, 3), BN-folded
    if cin_range is not None:
        wgt = wgt[:, cin_range[0]:cin_range[1]]
    bands = []
    for dy in range(3):
        m = 0.0
        for dx in range(3):
            tap = jnp.transpose(wgt[:, :, dy, dx])     # (Cin, Cout)
            sel = jnp.eye(width, width, k=1 - dx, dtype=jnp.float32)
            m = m + jnp.kron(sel, tap)
        bands.append(m)
    wband = jnp.stack(bands).astype(jnp.bfloat16)
    bias_row = jnp.tile(bias, width)[None, :].astype(jnp.float32)
    return wband, bias_row


def _pack_conv2x2s2(p, width):
    """Packed weights for Conv2d(2,2,0): (2*W*Cin, Wo*Cout) bf16 + (1, Wo*Cout) f32."""
    scale, bias = _fold_bn(p)
    wgt = p["w"] * scale[:, None, None, None]          # (Cout, Cin, 2, 2)
    wo = width // 2
    m = 0.0
    for dy in range(2):
        for dx in range(2):
            tap = jnp.transpose(wgt[:, :, dy, dx])     # (Cin, Cout)
            sel = jnp.zeros((2 * width, wo), jnp.float32)
            sel = sel.at[dy * width + 2 * jnp.arange(wo) + dx,
                         jnp.arange(wo)].set(1.0)
            m = m + jnp.kron(sel, tap)
    bias_row = jnp.tile(bias, wo)[None, :].astype(jnp.float32)
    return m.astype(jnp.bfloat16), bias_row


def _pack_deconv2x2s2(p, width):
    """Packed weights for ConvTranspose2d(2,2,0): (W*Cin, 2*Wo*Cout) bf16 + bias row."""
    scale, bias = _fold_bn(p)
    wgt = p["w"] * scale[None, :, None, None]          # (Cin, Cout, 2, 2)
    wo = 2 * width
    m = 0.0
    for dy in range(2):
        for dx in range(2):
            tap = wgt[:, :, dy, dx]                    # (Cin, Cout)
            sel = jnp.zeros((width, 2 * wo), jnp.float32)
            sel = sel.at[jnp.arange(width),
                         dy * wo + 2 * jnp.arange(width) + dx].set(1.0)
            m = m + jnp.kron(sel, tap)
    bias_row = jnp.tile(bias, 2 * wo)[None, :].astype(jnp.float32)
    return m.astype(jnp.bfloat16), bias_row


def pack_unet_params(params, height, width, cin):
    """Pre-pack all weights ONCE (eval-mode, so this is free): BN folded into
    bf16 banded matrices keyed to each layer's spatial width; decoder convs get
    split (decoder-path / skip-path) banks so the skip concat fuses in-kernel."""
    del height  # spatial height does not enter the packing
    layers = []
    w, c = width, cin
    conv_ps, deconv_ps = params["conv"], params["deconv"]
    saved_c = []
    for i, p in enumerate(conv_ps):
        save = (i % 2 == 0 and i != len(conv_ps) - 1)
        if save:
            saved_c.append(c)
        cout = p["w"].shape[0]
        if p["k"] == 3:
            wb, br = _pack_conv3x3(p, w)
            layers.append(dict(kind="conv3", wband=wb, bias=br,
                               cout=cout, save_input=save))
        else:
            wb, br = _pack_conv2x2s2(p, w)
            layers.append(dict(kind="conv2", wband=wb, bias=br,
                               cout=cout, save_input=save))
            w = w // 2
        c = cout
    pending_c = None
    for i, p in enumerate(deconv_ps):
        if i % 2 == 0:
            cout = p["w"].shape[1]
            wb, br = _pack_deconv2x2s2(p, w)
            layers.append(dict(kind="deconv", wband=wb, bias=br,
                               cout=cout, save_input=False))
            w, c = 2 * w, cout
            if saved_c:
                pending_c = saved_c.pop(-1)
        else:
            cout = p["w"].shape[0]
            if pending_c is not None:
                wbx, br = _pack_conv3x3(p, w, cin_range=(0, c))
                wbs, _ = _pack_conv3x3(p, w, cin_range=(c, c + pending_c))
                layers.append(dict(kind="conv3", wband=wbx, wband_skip=wbs,
                                   bias=br, cout=cout, save_input=False))
                pending_c = None
            else:
                wb, br = _pack_conv3x3(p, w)
                layers.append(dict(kind="conv3", wband=wb, bias=br,
                                   cout=cout, save_input=False))
            c = cout
    return layers


# ------------------------------ UNetBlock forward -----------------------------

def unet_block_forward(x_nhwc, layers):
    """Mirrors UNetBlock.forward (eval mode), NHWC in / NHWC (bf16) out."""
    n, h, w, c = x_nhwc.shape
    x = x_nhwc.astype(jnp.bfloat16).reshape(n, h, w * c)   # row-packed slabs
    sources = []
    pending = None
    for layer in layers:
        if layer["save_input"]:
            sources.append(x)
        kind = layer["kind"]
        if kind == "conv3":
            if "wband_skip" in layer:
                assert pending is not None
                x = conv3x3_bn_relu([x, pending],
                                    [layer["wband"], layer["wband_skip"]],
                                    layer["bias"])
                pending = None
            else:
                x = conv3x3_bn_relu([x], [layer["wband"]], layer["bias"])
            c = layer["cout"]
        elif kind == "conv2":
            x = conv2x2s2_bn_relu(x, layer["wband"], layer["bias"])
            w, c = w // 2, layer["cout"]
        else:  # deconv
            x = deconv2x2s2_bn_relu(x, layer["wband"], layer["bias"])
            w, c = 2 * w, layer["cout"]
            if sources:
                pending = sources.pop(-1)   # fused into the next conv (no HBM concat)
    return x.reshape(n, x.shape[1], w, c)


# ------------------------------ plain-JAX reference ---------------------------

def _ref_bn_relu(y, p):
    y = p["gamma"] * (y - p["mean"]) / jnp.sqrt(p["var"] + _BN_EPS) + p["beta"]
    return jnp.maximum(y, 0.0)


def _ref_conv_block(x, p, stride, pad):
    w_hwio = jnp.transpose(p["w"], (2, 3, 1, 0))
    y = lax.conv_general_dilated(
        x, w_hwio, (stride, stride), ((pad, pad), (pad, pad)),
        dimension_numbers=("NHWC", "HWIO", "NHWC"),
        precision=lax.Precision.HIGHEST) + p["b"]
    return _ref_bn_relu(y, p)


def _ref_deconv_block(x, p):
    # ConvTranspose2d(k=2, s=2, p=0) == lhs-dilated conv with flipped kernel
    w_hwio = jnp.transpose(jnp.flip(p["w"], axis=(2, 3)), (2, 3, 0, 1))
    y = lax.conv_general_dilated(
        x, w_hwio, (1, 1), ((1, 1), (1, 1)), lhs_dilation=(2, 2),
        dimension_numbers=("NHWC", "HWIO", "NHWC"),
        precision=lax.Precision.HIGHEST) + p["b"]
    return _ref_bn_relu(y, p)


def ref_forward(x_nhwc, params):
    sources = []
    x = x_nhwc
    conv_ps = params["conv"]
    for i, p in enumerate(conv_ps):
        if i % 2 == 0 and i != len(conv_ps) - 1:
            sources.append(x)
        if p["k"] == 3:
            x = _ref_conv_block(x, p, 1, 1)
        else:
            x = _ref_conv_block(x, p, 2, 0)
    for i, p in enumerate(params["deconv"]):
        if i % 2 == 0:
            x = _ref_deconv_block(x, p)
            if sources:
                x = jnp.concatenate([x, sources.pop(-1)], axis=-1)
        else:
            x = _ref_conv_block(x, p, 1, 1)
    return x


# ------------------------------ parameter init --------------------------------

def _make_block_params(key, cin, cout, k, transposed=False):
    ks = jax.random.split(key, 6)
    fan_in = cin * k * k
    wshape = (cin, cout, k, k) if transposed else (cout, cin, k, k)
    return dict(
        w=jax.random.normal(ks[0], wshape, jnp.float32) * (2.0 / fan_in) ** 0.5,
        b=0.1 * jax.random.normal(ks[1], (cout,), jnp.float32),
        gamma=1.0 + 0.1 * jax.random.normal(ks[2], (cout,), jnp.float32),
        beta=0.1 * jax.random.normal(ks[3], (cout,), jnp.float32),
        mean=0.1 * jax.random.normal(ks[4], (cout,), jnp.float32),
        var=0.5 + jax.random.uniform(ks[5], (cout,), jnp.float32),
        k=k,
    )


def make_unet_params(key, feat):
    keys = jax.random.split(key, 9)
    conv = [
        _make_block_params(keys[0], feat, feat, 3),
        _make_block_params(keys[1], feat, feat, 2),
        _make_block_params(keys[2], feat, feat, 3),
        _make_block_params(keys[3], feat, feat, 2),
        _make_block_params(keys[4], feat, feat, 3),
    ]
    deconv = [
        _make_block_params(keys[5], feat, feat, 2, transposed=True),
        _make_block_params(keys[6], 2 * feat, feat, 3),
        _make_block_params(keys[7], feat, feat, 2, transposed=True),
        _make_block_params(keys[8], 2 * feat, feat, 3),
    ]
    return dict(conv=conv, deconv=deconv)


# ------------------------------------ main -------------------------------------

if __name__ == "__main__":
    feat = 8
    n, h, w = 2, 16, 16

    root = jax.random.PRNGKey(0)
    k_x, k_p = jax.random.split(root)

    # PyTorch-convention NCHW input
    x_nchw = jax.random.normal(k_x, (n, feat, h, w), jnp.float32)
    params = make_unet_params(k_p, feat)

    # NCHW -> NHWC for the kernels
    x_nhwc = jnp.transpose(x_nchw, (0, 2, 3, 1))

    # One-time weight packing (BN folded, bf16, banded)    -- review: pre-pack.
    layers = pack_unet_params(params, h, w, feat)

    # jit the whole forward (9 pallas_calls + tiny reshape/pad glue) into one
    # executable                                           -- review: jit.
    fwd = jax.jit(lambda xx: unet_block_forward(xx, layers))
    out_nhwc = jax.block_until_ready(fwd(x_nhwc))

    # shape check against the PyTorch module's NCHW output convention
    out_nchw = jnp.transpose(out_nhwc, (0, 3, 1, 2))
    assert out_nchw.shape == (n, feat, h, w), out_nchw.shape

    # numerical check vs. plain-JAX f32 reference (tolerance accounts for bf16
    # activations/weights through 9 fused conv/deconv layers)
    ref_fn = jax.jit(lambda xx: ref_forward(xx, params))
    ref_nhwc = jax.block_until_ready(ref_fn(x_nhwc))
    err = float(jnp.max(jnp.abs(out_nhwc.astype(jnp.float32) - ref_nhwc)))
    scale = float(jnp.max(jnp.abs(ref_nhwc))) + 1e-6
    assert err / scale < 5e-2, f"mismatch: abs err {err}, scale {scale}"

    print("KERNEL_OK")
</pallas_src>

<mosaic_0001>
module attributes {stable_mosaic.version = 11 : i64} {
  func.func @_matmul_bias_relu_kernel(%arg0: i32, %arg1: memref<1x8x256xbf16, #tpu.memory_space<vmem>>, %arg2: memref<256x64xbf16, #tpu.memory_space<vmem>>, %arg3: memref<1x64xf32, #tpu.memory_space<vmem>>, %arg4: memref<1x8x64xbf16, #tpu.memory_space<vmem>>) attributes {dimension_semantics = [#tpu.dimension_semantics<parallel>], iteration_bounds = array<i64: 2>, scalar_prefetch = 0 : i64, scratch_operands = 0 : i64, tpu.core_type = #tpu.core_type<tc>, window_params = [{transform_indices = @transform_0, window_bounds = array<i64: 1, 8, 256>}, {pipeline_mode = #tpu.pipeline_mode<synchronous>, transform_indices = @transform_1, window_bounds = array<i64: 256, 64>}, {pipeline_mode = #tpu.pipeline_mode<synchronous>, transform_indices = @transform_2, window_bounds = array<i64: 1, 64>}, {transform_indices = @transform_3, window_bounds = array<i64: 1, 8, 64>}]} {
    %c0 = arith.constant 0 : index
    %c0_0 = arith.constant 0 : index
    %c0_1 = arith.constant 0 : index
    %0 = vector.load %arg1[%c0, %c0_0, %c0_1] : memref<1x8x256xbf16, #tpu.memory_space<vmem>>, vector<1x8x256xbf16>
    %1 = vector.shape_cast %0 : vector<1x8x256xbf16> to vector<8x256xbf16>
    %c0_2 = arith.constant 0 : index
    %c0_3 = arith.constant 0 : index
    %2 = vector.load %arg2[%c0_2, %c0_3] : memref<256x64xbf16, #tpu.memory_space<vmem>>, vector<256x64xbf16>
    %cst = arith.constant dense<0.000000e+00> : vector<8x64xf32>
    %3 = tpu.matmul %1, %2, %cst {dimension_numbers = #tpu.dot_dimension_numbers<[1], [0], [0], [1], [0, 0, 1, 1], [], []>} : vector<8x256xbf16>, vector<256x64xbf16>, vector<8x64xf32> -> vector<8x64xf32>
    %c0_4 = arith.constant 0 : index
    %c0_5 = arith.constant 0 : index
    %4 = vector.load %arg3[%c0_4, %c0_5] : memref<1x64xf32, #tpu.memory_space<vmem>>, vector<1x64xf32>
    %5 = vector.broadcast %4 : vector<1x64xf32> to vector<8x64xf32>
    %6 = arith.addf %3, %5 : vector<8x64xf32>
    %cst_6 = arith.constant 0.000000e+00 : f32
    %7 = vector.broadcast %cst_6 : f32 to vector<8x64xf32>
    %8 = arith.maximumf %6, %7 : vector<8x64xf32>
    %9 = arith.truncf %8 : vector<8x64xf32> to vector<8x64xbf16>
    %c0_7 = arith.constant 0 : index
    %c0_8 = arith.constant 0 : index
    %c0_9 = arith.constant 0 : index
    %10 = vector.load %arg4[%c0_7, %c0_8, %c0_9] : memref<1x8x64xbf16, #tpu.memory_space<vmem>>, vector<1x8x64xbf16>
    %11 = vector.shape_cast %10 : vector<1x8x64xbf16> to vector<8x64xbf16>
    %12 = vector.shape_cast %9 : vector<8x64xbf16> to vector<1x8x64xbf16>
    tpu.vector_store %arg4[%c0_7, %c0_8, %c0_9], %12 {strides = array<i32>} : memref<1x8x64xbf16, #tpu.memory_space<vmem>>, vector<1x8x64xbf16>,
    return
  }
  func.func @transform_0(%arg0: i32) -> (i32, i32, i32) {
    %c0_i32 = arith.constant 0 : i32
    %c0_i32_0 = arith.constant 0 : i32
    %c0_i32_1 = arith.constant 0 : i32
    return %arg0, %c0_i32, %c0_i32_0 : i32, i32, i32
  }
  func.func @transform_1(%arg0: i32) -> (i32, i32) {
    %c0_i32 = arith.constant 0 : i32
    %c0_i32_0 = arith.constant 0 : i32
    %c0_i32_1 = arith.constant 0 : i32
    return %c0_i32, %c0_i32_0 : i32, i32
  }
  func.func @transform_2(%arg0: i32) -> (i32, i32) {
    %c0_i32 = arith.constant 0 : i32
    %c0_i32_0 = arith.constant 0 : i32
    %c0_i32_1 = arith.constant 0 : i32
    return %c0_i32, %c0_i32_0 : i32, i32
  }
  func.func @transform_3(%arg0: i32) -> (i32, i32, i32) {
    %c0_i32 = arith.constant 0 : i32
    %c0_i32_0 = arith.constant 0 : i32
    %c0_i32_1 = arith.constant 0 : i32
    return %arg0, %c0_i32, %c0_i32_0 : i32, i32, i32
  }
}

module attributes {stable_mosaic.version = 11 : i64} {
  func.func @_conv3x3_rows_kernel(%arg0: i32, %arg1: memref<1x18x128xbf16, #tpu.memory_space<vmem>>, %arg2: memref<3x128x128xbf16, #tpu.memory_space<vmem>>, %arg3: memref<1x128xf32, #tpu.memory_space<vmem>>, %arg4: memref<1x16x128xbf16, #tpu.memory_space<vmem>>) attributes {dimension_semantics = [#tpu.dimension_semantics<parallel>], iteration_bounds = array<i64: 2>, scalar_prefetch = 0 : i64, scratch_operands = 0 : i64, tpu.core_type = #tpu.core_type<tc>, window_params = [{transform_indices = @transform_0, window_bounds = array<i64: 1, 18, 128>}, {pipeline_mode = #tpu.pipeline_mode<synchronous>, transform_indices = @transform_1, window_bounds = array<i64: 3, 128, 128>}, {pipeline_mode = #tpu.pipeline_mode<synchronous>, transform_indices = @transform_2, window_bounds = array<i64: 1, 128>}, {transform_indices = @transform_3, window_bounds = array<i64: 1, 16, 128>}]} {
    %c0 = arith.constant 0 : index
    %c0_0 = arith.constant 0 : index
    %c0_1 = arith.constant 0 : index
    %0 = vector.load %arg1[%c0, %c0_0, %c0_1] : memref<1x18x128xbf16, #tpu.memory_space<vmem>>, vector<1x18x128xbf16>
    %1 = vector.shape_cast %0 : vector<1x18x128xbf16> to vector<18x128xbf16>
    %c0_2 = arith.constant 0 : index
    %c0_3 = arith.constant 0 : index
    %c0_4 = arith.constant 0 : index
    %2 = vector.load %arg2[%c0_2, %c0_3, %c0_4] : memref<3x128x128xbf16, #tpu.memory_space<vmem>>, vector<1x128x128xbf16>
    %3 = vector.shape_cast %2 : vector<1x128x128xbf16> to vector<128x128xbf16>
    %cst = arith.constant dense<0.000000e+00> : vector<18x128xf32>
    %4 = tpu.matmul %1, %3, %cst {dimension_numbers = #tpu.dot_dimension_numbers<[1], [0], [0], [1], [0, 0, 1, 1], [], []>} : vector<18x128xbf16>, vector<128x128xbf16>, vector<18x128xf32> -> vector<18x128xf32>
    %5 = vector.extract_strided_slice %4 {offsets = [0, 0], sizes = [16, 128], strides = [1, 1]} : vector<18x128xf32> to vector<16x128xf32>
    %c1 = arith.constant 1 : index
    %c0_5 = arith.constant 0 : index
    %c0_6 = arith.constant 0 : index
    %6 = vector.load %arg2[%c1, %c0_5, %c0_6] : memref<3x128x128xbf16, #tpu.memory_space<vmem>>, vector<1x128x128xbf16>
    %7 = vector.shape_cast %6 : vector<1x128x128xbf16> to vector<128x128xbf16>
    %cst_7 = arith.constant dense<0.000000e+00> : vector<18x128xf32>
    %8 = tpu.matmul %1, %7, %cst_7 {dimension_numbers = #tpu.dot_dimension_numbers<[1], [0], [0], [1], [0, 0, 1, 1], [], []>} : vector<18x128xbf16>, vector<128x128xbf16>, vector<18x128xf32> -> vector<18x128xf32>
    %9 = vector.extract_strided_slice %8 {offsets = [1, 0], sizes = [16, 128], strides = [1, 1]} : vector<18x128xf32> to vector<16x128xf32>
    %10 = arith.addf %5, %9 : vector<16x128xf32>
    %c2 = arith.constant 2 : index
    %c0_8 = arith.constant 0 : index
    %c0_9 = arith.constant 0 : index
    %11 = vector.load %arg2[%c2, %c0_8, %c0_9] : memref<3x128x128xbf16, #tpu.memory_space<vmem>>, vector<1x128x128xbf16>
    %12 = vector.shape_cast %11 : vector<1x128x128xbf16> to vector<128x128xbf16>
    %cst_10 = arith.constant dense<0.000000e+00> : vector<18x128xf32>
    %13 = tpu.matmul %1, %12, %cst_10 {dimension_numbers = #tpu.dot_dimension_numbers<[1], [0], [0], [1], [0, 0, 1, 1], [], []>} : vector<18x128xbf16>, vector<128x128xbf16>, vector<18x128xf32> -> vector<18x128xf32>
    %14 = vector.extract_strided_slice %13 {offsets = [2, 0], sizes = [16, 128], strides = [1, 1]} : vector<18x128xf32> to vector<16x128xf32>
    %15 = arith.addf %10, %14 : vector<16x128xf32>
    %c0_11 = arith.constant 0 : index
    %c0_12 = arith.constant 0 : index
    %16 = vector.load %arg3[%c0_11, %c0_12] : memref<1x128xf32, #tpu.memory_space<vmem>>, vector<1x128xf32>
    %17 = vector.broadcast %16 : vector<1x128xf32> to vector<16x128xf32>
    %18 = arith.addf %15, %17 : vector<16x128xf32>
    %cst_13 = arith.constant 0.000000e+00 : f32
    %19 = vector.broadcast %cst_13 : f32 to vector<16x128xf32>
    %20 = arith.maximumf %18, %19 : vector<16x128xf32>
    %21 = arith.truncf %20 : vector<16x128xf32> to vector<16x128xbf16>
    %c0_14 = arith.constant 0 : index
    %c0_15 = arith.constant 0 : index
    %c0_16 = arith.constant 0 : index
    %22 = vector.load %arg4[%c0_14, %c0_15, %c0_16] : memref<1x16x128xbf16, #tpu.memory_space<vmem>>, vector<1x16x128xbf16>
    %23 = vector.shape_cast %22 : vector<1x16x128xbf16> to vector<16x128xbf16>
    %24 = vector.shape_cast %21 : vector<16x128xbf16> to vector<1x16x128xbf16>
    tpu.vector_store %arg4[%c0_14, %c0_15, %c0_16], %24 {strides = array<i32>} : memref<1x16x128xbf16, #tpu.memory_space<vmem>>, vector<1x16x128xbf16>,
    return
  }
  func.func @transform_0(%arg0: i32) -> (i32, i32, i32) {
    %c0_i32 = arith.constant 0 : i32
    %c0_i32_0 = arith.constant 0 : i32
    %c0_i32_1 = arith.constant 0 : i32
    return %arg0, %c0_i32, %c0_i32_0 : i32, i32, i32
  }
  func.func @transform_1(%arg0: i32) -> (i32, i32, i32) {
    %c0_i32 = arith.constant 0 : i32
    %c0_i32_0 = arith.constant 0 : i32
    %c0_i32_1 = arith.constant 0 : i32
    %c0_i32_2 = arith.constant 0 : i32
    return %c0_i32, %c0_i32_0, %c0_i32_1 : i32, i32, i32
  }
  func.func @transform_2(%arg0: i32) -> (i32, i32) {
    %c0_i32 = arith.constant 0 : i32
    %c0_i32_0 = arith.constant 0 : i32
    %c0_i32_1 = arith.constant 0 : i32
    return %c0_i32, %c0_i32_0 : i32, i32
  }
  func.func @transform_3(%arg0: i32) -> (i32, i32, i32) {
    %c0_i32 = arith.constant 0 : i32
    %c0_i32_0 = arith.constant 0 : i32
    %c0_i32_1 = arith.constant 0 : i32
    return %arg0, %c0_i32, %c0_i32_0 : i32, i32, i32
  }
}

module attributes {stable_mosaic.version = 11 : i64} {
  func.func @_matmul_bias_relu_kernel(%arg0: i32, %arg1: memref<1x4x128xbf16, #tpu.memory_space<vmem>>, %arg2: memref<128x32xbf16, #tpu.memory_space<vmem>>, %arg3: memref<1x32xf32, #tpu.memory_space<vmem>>, %arg4: memref<1x4x32xbf16, #tpu.memory_space<vmem>>) attributes {dimension_semantics = [#tpu.dimension_semantics<parallel>], iteration_bounds = array<i64: 2>, scalar_prefetch = 0 : i64, scratch_operands = 0 : i64, tpu.core_type = #tpu.core_type<tc>, window_params = [{transform_indices = @transform_0, window_bounds = array<i64: 1, 4, 128>}, {pipeline_mode = #tpu.pipeline_mode<synchronous>, transform_indices = @transform_1, window_bounds = array<i64: 128, 32>}, {pipeline_mode = #tpu.pipeline_mode<synchronous>, transform_indices = @transform_2, window_bounds = array<i64: 1, 32>}, {transform_indices = @transform_3, window_bounds = array<i64: 1, 4, 32>}]} {
    %c0 = arith.constant 0 : index
    %c0_0 = arith.constant 0 : index
    %c0_1 = arith.constant 0 : index
    %0 = vector.load %arg1[%c0, %c0_0, %c0_1] : memref<1x4x128xbf16, #tpu.memory_space<vmem>>, vector<1x4x128xbf16>
    %1 = vector.shape_cast %0 : vector<1x4x128xbf16> to vector<4x128xbf16>
    %c0_2 = arith.constant 0 : index
    %c0_3 = arith.constant 0 : index
    %2 = vector.load %arg2[%c0_2, %c0_3] : memref<128x32xbf16, #tpu.memory_space<vmem>>, vector<128x32xbf16>
    %cst = arith.constant dense<0.000000e+00> : vector<4x32xf32>
    %3 = tpu.matmul %1, %2, %cst {dimension_numbers = #tpu.dot_dimension_numbers<[1], [0], [0], [1], [0, 0, 1, 1], [], []>} : vector<4x128xbf16>, vector<128x32xbf16>, vector<4x32xf32> -> vector<4x32xf32>
    %c0_4 = arith.constant 0 : index
    %c0_5 = arith.constant 0 : index
    %4 = vector.load %arg3[%c0_4, %c0_5] : memref<1x32xf32, #tpu.memory_space<vmem>>, vector<1x32xf32>
    %5 = vector.broadcast %4 : vector<1x32xf32> to vector<4x32xf32>
    %6 = arith.addf %3, %5 : vector<4x32xf32>
    %cst_6 = arith.constant 0.000000e+00 : f32
    %7 = vector.broadcast %cst_6 : f32 to vector<4x32xf32>
    %8 = arith.maximumf %6, %7 : vector<4x32xf32>
    %9 = arith.truncf %8 : vector<4x32xf32> to vector<4x32xbf16>
    %c0_7 = arith.constant 0 : index
    %c0_8 = arith.constant 0 : index
    %c0_9 = arith.constant 0 : index
    %10 = vector.load %arg4[%c0_7, %c0_8, %c0_9] : memref<1x4x32xbf16, #tpu.memory_space<vmem>>, vector<1x4x32xbf16>
    %11 = vector.shape_cast %10 : vector<1x4x32xbf16> to vector<4x32xbf16>
    %12 = vector.shape_cast %9 : vector<4x32xbf16> to vector<1x4x32xbf16>
    tpu.vector_store %arg4[%c0_7, %c0_8, %c0_9], %12 {strides = array<i32>} : memref<1x4x32xbf16, #tpu.memory_space<vmem>>, vector<1x4x32xbf16>,
    return
  }
  func.func @transform_0(%arg0: i32) -> (i32, i32, i32) {
    %c0_i32 = arith.constant 0 : i32
    %c0_i32_0 = arith.constant 0 : i32
    %c0_i32_1 = arith.constant 0 : i32
    return %arg0, %c0_i32, %c0_i32_0 : i32, i32, i32
  }
  func.func @transform_1(%arg0: i32) -> (i32, i32) {
    %c0_i32 = arith.constant 0 : i32
    %c0_i32_0 = arith.constant 0 : i32
    %c0_i32_1 = arith.constant 0 : i32
    return %c0_i32, %c0_i32_0 : i32, i32
  }
  func.func @transform_2(%arg0: i32) -> (i32, i32) {
    %c0_i32 = arith.constant 0 : i32
    %c0_i32_0 = arith.constant 0 : i32
    %c0_i32_1 = arith.constant 0 : i32
    return %c0_i32, %c0_i32_0 : i32, i32
  }
  func.func @transform_3(%arg0: i32) -> (i32, i32, i32) {
    %c0_i32 = arith.constant 0 : i32
    %c0_i32_0 = arith.constant 0 : i32
    %c0_i32_1 = arith.constant 0 : i32
    return %arg0, %c0_i32, %c0_i32_0 : i32, i32, i32
  }
}

module attributes {stable_mosaic.version = 11 : i64} {
  func.func @_conv3x3_rows_kernel(%arg0: i32, %arg1: memref<1x10x64xbf16, #tpu.memory_space<vmem>>, %arg2: memref<3x64x64xbf16, #tpu.memory_space<vmem>>, %arg3: memref<1x64xf32, #tpu.memory_space<vmem>>, %arg4: memref<1x8x64xbf16, #tpu.memory_space<vmem>>) attributes {dimension_semantics = [#tpu.dimension_semantics<parallel>], iteration_bounds = array<i64: 2>, scalar_prefetch = 0 : i64, scratch_operands = 0 : i64, tpu.core_type = #tpu.core_type<tc>, window_params = [{transform_indices = @transform_0, window_bounds = array<i64: 1, 10, 64>}, {pipeline_mode = #tpu.pipeline_mode<synchronous>, transform_indices = @transform_1, window_bounds = array<i64: 3, 64, 64>}, {pipeline_mode = #tpu.pipeline_mode<synchronous>, transform_indices = @transform_2, window_bounds = array<i64: 1, 64>}, {transform_indices = @transform_3, window_bounds = array<i64: 1, 8, 64>}]} {
    %c0 = arith.constant 0 : index
    %c0_0 = arith.constant 0 : index
    %c0_1 = arith.constant 0 : index
    %0 = vector.load %arg1[%c0, %c0_0, %c0_1] : memref<1x10x64xbf16, #tpu.memory_space<vmem>>, vector<1x10x64xbf16>
    %1 = vector.shape_cast %0 : vector<1x10x64xbf16> to vector<10x64xbf16>
    %c0_2 = arith.constant 0 : index
    %c0_3 = arith.constant 0 : index
    %c0_4 = arith.constant 0 : index
    %2 = vector.load %arg2[%c0_2, %c0_3, %c0_4] : memref<3x64x64xbf16, #tpu.memory_space<vmem>>, vector<1x64x64xbf16>
    %3 = vector.shape_cast %2 : vector<1x64x64xbf16> to vector<64x64xbf16>
    %cst = arith.constant dense<0.000000e+00> : vector<10x64xf32>
    %4 = tpu.matmul %1, %3, %cst {dimension_numbers = #tpu.dot_dimension_numbers<[1], [0], [0], [1], [0, 0, 1, 1], [], []>} : vector<10x64xbf16>, vector<64x64xbf16>, vector<10x64xf32> -> vector<10x64xf32>
    %5 = vector.extract_strided_slice %4 {offsets = [0, 0], sizes = [8, 64], strides = [1, 1]} : vector<10x64xf32> to vector<8x64xf32>
    %c1 = arith.constant 1 : index
    %c0_5 = arith.constant 0 : index
    %c0_6 = arith.constant 0 : index
    %6 = vector.load %arg2[%c1, %c0_5, %c0_6] : memref<3x64x64xbf16, #tpu.memory_space<vmem>>, vector<1x64x64xbf16>
    %7 = vector.shape_cast %6 : vector<1x64x64xbf16> to vector<64x64xbf16>
    %cst_7 = arith.constant dense<0.000000e+00> : vector<10x64xf32>
    %8 = tpu.matmul %1, %7, %cst_7 {dimension_numbers = #tpu.dot_dimension_numbers<[1], [0], [0], [1], [0, 0, 1, 1], [], []>} : vector<10x64xbf16>, vector<64x64xbf16>, vector<10x64xf32> -> vector<10x64xf32>
    %9 = vector.extract_strided_slice %8 {offsets = [1, 0], sizes = [8, 64], strides = [1, 1]} : vector<10x64xf32> to vector<8x64xf32>
    %10 = arith.addf %5, %9 : vector<8x64xf32>
    %c2 = arith.constant 2 : index
    %c0_8 = arith.constant 0 : index
    %c0_9 = arith.constant 0 : index
    %11 = vector.load %arg2[%c2, %c0_8, %c0_9] : memref<3x64x64xbf16, #tpu.memory_space<vmem>>, vector<1x64x64xbf16>
    %12 = vector.shape_cast %11 : vector<1x64x64xbf16> to vector<64x64xbf16>
    %cst_10 = arith.constant dense<0.000000e+00> : vector<10x64xf32>
    %13 = tpu.matmul %1, %12, %cst_10 {dimension_numbers = #tpu.dot_dimension_numbers<[1], [0], [0], [1], [0, 0, 1, 1], [], []>} : vector<10x64xbf16>, vector<64x64xbf16>, vector<10x64xf32> -> vector<10x64xf32>
    %14 = vector.extract_strided_slice %13 {offsets = [2, 0], sizes = [8, 64], strides = [1, 1]} : vector<10x64xf32> to vector<8x64xf32>
    %15 = arith.addf %10, %14 : vector<8x64xf32>
    %c0_11 = arith.constant 0 : index
    %c0_12 = arith.constant 0 : index
    %16 = vector.load %arg3[%c0_11, %c0_12] : memref<1x64xf32, #tpu.memory_space<vmem>>, vector<1x64xf32>
    %17 = vector.broadcast %16 : vector<1x64xf32> to vector<8x64xf32>
    %18 = arith.addf %15, %17 : vector<8x64xf32>
    %cst_13 = arith.constant 0.000000e+00 : f32
    %19 = vector.broadcast %cst_13 : f32 to vector<8x64xf32>
    %20 = arith.maximumf %18, %19 : vector<8x64xf32>
    %21 = arith.truncf %20 : vector<8x64xf32> to vector<8x64xbf16>
    %c0_14 = arith.constant 0 : index
    %c0_15 = arith.constant 0 : index
    %c0_16 = arith.constant 0 : index
    %22 = vector.load %arg4[%c0_14, %c0_15, %c0_16] : memref<1x8x64xbf16, #tpu.memory_space<vmem>>, vector<1x8x64xbf16>
    %23 = vector.shape_cast %22 : vector<1x8x64xbf16> to vector<8x64xbf16>
    %24 = vector.shape_cast %21 : vector<8x64xbf16> to vector<1x8x64xbf16>
    tpu.vector_store %arg4[%c0_14, %c0_15, %c0_16], %24 {strides = array<i32>} : memref<1x8x64xbf16, #tpu.memory_space<vmem>>, vector<1x8x64xbf16>,
    return
  }
  func.func @transform_0(%arg0: i32) -> (i32, i32, i32) {
    %c0_i32 = arith.constant 0 : i32
    %c0_i32_0 = arith.constant 0 : i32
    %c0_i32_1 = arith.constant 0 : i32
    return %arg0, %c0_i32, %c0_i32_0 : i32, i32, i32
  }
  func.func @transform_1(%arg0: i32) -> (i32, i32, i32) {
    %c0_i32 = arith.constant 0 : i32
    %c0_i32_0 = arith.constant 0 : i32
    %c0_i32_1 = arith.constant 0 : i32
    %c0_i32_2 = arith.constant 0 : i32
    return %c0_i32, %c0_i32_0, %c0_i32_1 : i32, i32, i32
  }
  func.func @transform_2(%arg0: i32) -> (i32, i32) {
    %c0_i32 = arith.constant 0 : i32
    %c0_i32_0 = arith.constant 0 : i32
    %c0_i32_1 = arith.constant 0 : i32
    return %c0_i32, %c0_i32_0 : i32, i32
  }
  func.func @transform_3(%arg0: i32) -> (i32, i32, i32) {
    %c0_i32 = arith.constant 0 : i32
    %c0_i32_0 = arith.constant 0 : i32
    %c0_i32_1 = arith.constant 0 : i32
    return %arg0, %c0_i32, %c0_i32_0 : i32, i32, i32
  }
}

module attributes {stable_mosaic.version = 11 : i64} {
  func.func @_conv3x3_rows_kernel(%arg0: i32, %arg1: memref<1x6x32xbf16, #tpu.memory_space<vmem>>, %arg2: memref<3x32x32xbf16, #tpu.memory_space<vmem>>, %arg3: memref<1x32xf32, #tpu.memory_space<vmem>>, %arg4: memref<1x4x32xbf16, #tpu.memory_space<vmem>>) attributes {dimension_semantics = [#tpu.dimension_semantics<parallel>], iteration_bounds = array<i64: 2>, scalar_prefetch = 0 : i64, scratch_operands = 0 : i64, tpu.core_type = #tpu.core_type<tc>, window_params = [{transform_indices = @transform_0, window_bounds = array<i64: 1, 6, 32>}, {pipeline_mode = #tpu.pipeline_mode<synchronous>, transform_indices = @transform_1, window_bounds = array<i64: 3, 32, 32>}, {pipeline_mode = #tpu.pipeline_mode<synchronous>, transform_indices = @transform_2, window_bounds = array<i64: 1, 32>}, {transform_indices = @transform_3, window_bounds = array<i64: 1, 4, 32>}]} {
    %c0 = arith.constant 0 : index
    %c0_0 = arith.constant 0 : index
    %c0_1 = arith.constant 0 : index
    %0 = vector.load %arg1[%c0, %c0_0, %c0_1] : memref<1x6x32xbf16, #tpu.memory_space<vmem>>, vector<1x6x32xbf16>
    %1 = vector.shape_cast %0 : vector<1x6x32xbf16> to vector<6x32xbf16>
    %c0_2 = arith.constant 0 : index
    %c0_3 = arith.constant 0 : index
    %c0_4 = arith.constant 0 : index
    %2 = vector.load %arg2[%c0_2, %c0_3, %c0_4] : memref<3x32x32xbf16, #tpu.memory_space<vmem>>, vector<1x32x32xbf16>
    %3 = vector.shape_cast %2 : vector<1x32x32xbf16> to vector<32x32xbf16>
    %cst = arith.constant dense<0.000000e+00> : vector<6x32xf32>
    %4 = tpu.matmul %1, %3, %cst {dimension_numbers = #tpu.dot_dimension_numbers<[1], [0], [0], [1], [0, 0, 1, 1], [], []>} : vector<6x32xbf16>, vector<32x32xbf16>, vector<6x32xf32> -> vector<6x32xf32>
    %5 = vector.extract_strided_slice %4 {offsets = [0, 0], sizes = [4, 32], strides = [1, 1]} : vector<6x32xf32> to vector<4x32xf32>
    %c1 = arith.constant 1 : index
    %c0_5 = arith.constant 0 : index
    %c0_6 = arith.constant 0 : index
    %6 = vector.load %arg2[%c1, %c0_5, %c0_6] : memref<3x32x32xbf16, #tpu.memory_space<vmem>>, vector<1x32x32xbf16>
    %7 = vector.shape_cast %6 : vector<1x32x32xbf16> to vector<32x32xbf16>
    %cst_7 = arith.constant dense<0.000000e+00> : vector<6x32xf32>
    %8 = tpu.matmul %1, %7, %cst_7 {dimension_numbers = #tpu.dot_dimension_numbers<[1], [0], [0], [1], [0, 0, 1, 1], [], []>} : vector<6x32xbf16>, vector<32x32xbf16>, vector<6x32xf32> -> vector<6x32xf32>
    %9 = vector.extract_strided_slice %8 {offsets = [1, 0], sizes = [4, 32], strides = [1, 1]} : vector<6x32xf32> to vector<4x32xf32>
    %10 = arith.addf %5, %9 : vector<4x32xf32>
    %c2 = arith.constant 2 : index
    %c0_8 = arith.constant 0 : index
    %c0_9 = arith.constant 0 : index
    %11 = vector.load %arg2[%c2, %c0_8, %c0_9] : memref<3x32x32xbf16, #tpu.memory_space<vmem>>, vector<1x32x32xbf16>
    %12 = vector.shape_cast %11 : vector<1x32x32xbf16> to vector<32x32xbf16>
    %cst_10 = arith.constant dense<0.000000e+00> : vector<6x32xf32>
    %13 = tpu.matmul %1, %12, %cst_10 {dimension_numbers = #tpu.dot_dimension_numbers<[1], [0], [0], [1], [0, 0, 1, 1], [], []>} : vector<6x32xbf16>, vector<32x32xbf16>, vector<6x32xf32> -> vector<6x32xf32>
    %14 = vector.extract_strided_slice %13 {offsets = [2, 0], sizes = [4, 32], strides = [1, 1]} : vector<6x32xf32> to vector<4x32xf32>
    %15 = arith.addf %10, %14 : vector<4x32xf32>
    %c0_11 = arith.constant 0 : index
    %c0_12 = arith.constant 0 : index
    %16 = vector.load %arg3[%c0_11, %c0_12] : memref<1x32xf32, #tpu.memory_space<vmem>>, vector<1x32xf32>
    %17 = vector.broadcast %16 : vector<1x32xf32> to vector<4x32xf32>
    %18 = arith.addf %15, %17 : vector<4x32xf32>
    %cst_13 = arith.constant 0.000000e+00 : f32
    %19 = vector.broadcast %cst_13 : f32 to vector<4x32xf32>
    %20 = arith.maximumf %18, %19 : vector<4x32xf32>
    %21 = arith.truncf %20 : vector<4x32xf32> to vector<4x32xbf16>
    %c0_14 = arith.constant 0 : index
    %c0_15 = arith.constant 0 : index
    %c0_16 = arith.constant 0 : index
    %22 = vector.load %arg4[%c0_14, %c0_15, %c0_16] : memref<1x4x32xbf16, #tpu.memory_space<vmem>>, vector<1x4x32xbf16>
    %23 = vector.shape_cast %22 : vector<1x4x32xbf16> to vector<4x32xbf16>
    %24 = vector.shape_cast %21 : vector<4x32xbf16> to vector<1x4x32xbf16>
    tpu.vector_store %arg4[%c0_14, %c0_15, %c0_16], %24 {strides = array<i32>} : memref<1x4x32xbf16, #tpu.memory_space<vmem>>, vector<1x4x32xbf16>,
    return
  }
  func.func @transform_0(%arg0: i32) -> (i32, i32, i32) {
    %c0_i32 = arith.constant 0 : i32
    %c0_i32_0 = arith.constant 0 : i32
    %c0_i32_1 = arith.constant 0 : i32
    return %arg0, %c0_i32, %c0_i32_0 : i32, i32, i32
  }
  func.func @transform_1(%arg0: i32) -> (i32, i32, i32) {
    %c0_i32 = arith.constant 0 : i32
    %c0_i32_0 = arith.constant 0 : i32
    %c0_i32_1 = arith.constant 0 : i32
    %c0_i32_2 = arith.constant 0 : i32
    return %c0_i32, %c0_i32_0, %c0_i32_1 : i32, i32, i32
  }
  func.func @transform_2(%arg0: i32) -> (i32, i32) {
    %c0_i32 = arith.constant 0 : i32
    %c0_i32_0 = arith.constant 0 : i32
    %c0_i32_1 = arith.constant 0 : i32
    return %c0_i32, %c0_i32_0 : i32, i32
  }
  func.func @transform_3(%arg0: i32) -> (i32, i32, i32) {
    %c0_i32 = arith.constant 0 : i32
    %c0_i32_0 = arith.constant 0 : i32
    %c0_i32_1 = arith.constant 0 : i32
    return %arg0, %c0_i32, %c0_i32_0 : i32, i32, i32
  }
}

module attributes {stable_mosaic.version = 11 : i64} {
  func.func @_matmul_bias_relu_kernel(%arg0: i32, %arg1: memref<1x4x32xbf16, #tpu.memory_space<vmem>>, %arg2: memref<32x128xbf16, #tpu.memory_space<vmem>>, %arg3: memref<1x128xf32, #tpu.memory_space<vmem>>, %arg4: memref<1x4x128xbf16, #tpu.memory_space<vmem>>) attributes {dimension_semantics = [#tpu.dimension_semantics<parallel>], iteration_bounds = array<i64: 2>, scalar_prefetch = 0 : i64, scratch_operands = 0 : i64, tpu.core_type = #tpu.core_type<tc>, window_params = [{transform_indices = @transform_0, window_bounds = array<i64: 1, 4, 32>}, {pipeline_mode = #tpu.pipeline_mode<synchronous>, transform_indices = @transform_1, window_bounds = array<i64: 32, 128>}, {pipeline_mode = #tpu.pipeline_mode<synchronous>, transform_indices = @transform_2, window_bounds = array<i64: 1, 128>}, {transform_indices = @transform_3, window_bounds = array<i64: 1, 4, 128>}]} {
    %c0 = arith.constant 0 : index
    %c0_0 = arith.constant 0 : index
    %c0_1 = arith.constant 0 : index
    %0 = vector.load %arg1[%c0, %c0_0, %c0_1] : memref<1x4x32xbf16, #tpu.memory_space<vmem>>, vector<1x4x32xbf16>
    %1 = vector.shape_cast %0 : vector<1x4x32xbf16> to vector<4x32xbf16>
    %c0_2 = arith.constant 0 : index
    %c0_3 = arith.constant 0 : index
    %2 = vector.load %arg2[%c0_2, %c0_3] : memref<32x128xbf16, #tpu.memory_space<vmem>>, vector<32x128xbf16>
    %cst = arith.constant dense<0.000000e+00> : vector<4x128xf32>
    %3 = tpu.matmul %1, %2, %cst {dimension_numbers = #tpu.dot_dimension_numbers<[1], [0], [0], [1], [0, 0, 1, 1], [], []>} : vector<4x32xbf16>, vector<32x128xbf16>, vector<4x128xf32> -> vector<4x128xf32>
    %c0_4 = arith.constant 0 : index
    %c0_5 = arith.constant 0 : index
    %4 = vector.load %arg3[%c0_4, %c0_5] : memref<1x128xf32, #tpu.memory_space<vmem>>, vector<1x128xf32>
    %5 = vector.broadcast %4 : vector<1x128xf32> to vector<4x128xf32>
    %6 = arith.addf %3, %5 : vector<4x128xf32>
    %cst_6 = arith.constant 0.000000e+00 : f32
    %7 = vector.broadcast %cst_6 : f32 to vector<4x128xf32>
    %8 = arith.maximumf %6, %7 : vector<4x128xf32>
    %9 = arith.truncf %8 : vector<4x128xf32> to vector<4x128xbf16>
    %c0_7 = arith.constant 0 : index
    %c0_8 = arith.constant 0 : index
    %c0_9 = arith.constant 0 : index
    %10 = vector.load %arg4[%c0_7, %c0_8, %c0_9] : memref<1x4x128xbf16, #tpu.memory_space<vmem>>, vector<1x4x128xbf16>
    %11 = vector.shape_cast %10 : vector<1x4x128xbf16> to vector<4x128xbf16>
    %12 = vector.shape_cast %9 : vector<4x128xbf16> to vector<1x4x128xbf16>
    tpu.vector_store %arg4[%c0_7, %c0_8, %c0_9], %12 {strides = array<i32>} : memref<1x4x128xbf16, #tpu.memory_space<vmem>>, vector<1x4x128xbf16>,
    return
  }
  func.func @transform_0(%arg0: i32) -> (i32, i32, i32) {
    %c0_i32 = arith.constant 0 : i32
    %c0_i32_0 = arith.constant 0 : i32
    %c0_i32_1 = arith.constant 0 : i32
    return %arg0, %c0_i32, %c0_i32_0 : i32, i32, i32
  }
  func.func @transform_1(%arg0: i32) -> (i32, i32) {
    %c0_i32 = arith.constant 0 : i32
    %c0_i32_0 = arith.constant 0 : i32
    %c0_i32_1 = arith.constant 0 : i32
    return %c0_i32, %c0_i32_0 : i32, i32
  }
  func.func @transform_2(%arg0: i32) -> (i32, i32) {
    %c0_i32 = arith.constant 0 : i32
    %c0_i32_0 = arith.constant 0 : i32
    %c0_i32_1 = arith.constant 0 : i32
    return %c0_i32, %c0_i32_0 : i32, i32
  }
  func.func @transform_3(%arg0: i32) -> (i32, i32, i32) {
    %c0_i32 = arith.constant 0 : i32
    %c0_i32_0 = arith.constant 0 : i32
    %c0_i32_1 = arith.constant 0 : i32
    return %arg0, %c0_i32, %c0_i32_0 : i32, i32, i32
  }
}

module attributes {stable_mosaic.version = 11 : i64} {
  func.func @_conv3x3_rows_kernel(%arg0: i32, %arg1: memref<1x10x64xbf16, #tpu.memory_space<vmem>>, %arg2: memref<1x10x64xbf16, #tpu.memory_space<vmem>>, %arg3: memref<3x64x64xbf16, #tpu.memory_space<vmem>>, %arg4: memref<3x64x64xbf16, #tpu.memory_space<vmem>>, %arg5: memref<1x64xf32, #tpu.memory_space<vmem>>, %arg6: memref<1x8x64xbf16, #tpu.memory_space<vmem>>) attributes {dimension_semantics = [#tpu.dimension_semantics<parallel>], iteration_bounds = array<i64: 2>, scalar_prefetch = 0 : i64, scratch_operands = 0 : i64, tpu.core_type = #tpu.core_type<tc>, window_params = [{transform_indices = @transform_0, window_bounds = array<i64: 1, 10, 64>}, {transform_indices = @transform_1, window_bounds = array<i64: 1, 10, 64>}, {pipeline_mode = #tpu.pipeline_mode<synchronous>, transform_indices = @transform_2, window_bounds = array<i64: 3, 64, 64>}, {pipeline_mode = #tpu.pipeline_mode<synchronous>, transform_indices = @transform_3, window_bounds = array<i64: 3, 64, 64>}, {pipeline_mode = #tpu.pipeline_mode<synchronous>, transform_indices = @transform_4, window_bounds = array<i64: 1, 64>}, {transform_indices = @transform_5, window_bounds = array<i64: 1, 8, 64>}]} {
    %c0 = arith.constant 0 : index
    %c0_0 = arith.constant 0 : index
    %c0_1 = arith.constant 0 : index
    %0 = vector.load %arg1[%c0, %c0_0, %c0_1] : memref<1x10x64xbf16, #tpu.memory_space<vmem>>, vector<1x10x64xbf16>
    %1 = vector.shape_cast %0 : vector<1x10x64xbf16> to vector<10x64xbf16>
    %c0_2 = arith.constant 0 : index
    %c0_3 = arith.constant 0 : index
    %c0_4 = arith.constant 0 : index
    %2 = vector.load %arg3[%c0_2, %c0_3, %c0_4] : memref<3x64x64xbf16, #tpu.memory_space<vmem>>, vector<1x64x64xbf16>
    %3 = vector.shape_cast %2 : vector<1x64x64xbf16> to vector<64x64xbf16>
    %cst = arith.constant dense<0.000000e+00> : vector<10x64xf32>
    %4 = tpu.matmul %1, %3, %cst {dimension_numbers = #tpu.dot_dimension_numbers<[1], [0], [0], [1], [0, 0, 1, 1], [], []>} : vector<10x64xbf16>, vector<64x64xbf16>, vector<10x64xf32> -> vector<10x64xf32>
    %5 = vector.extract_strided_slice %4 {offsets = [0, 0], sizes = [8, 64], strides = [1, 1]} : vector<10x64xf32> to vector<8x64xf32>
    %c1 = arith.constant 1 : index
    %c0_5 = arith.constant 0 : index
    %c0_6 = arith.constant 0 : index
    %6 = vector.load %arg3[%c1, %c0_5, %c0_6] : memref<3x64x64xbf16, #tpu.memory_space<vmem>>, vector<1x64x64xbf16>
    %7 = vector.shape_cast %6 : vector<1x64x64xbf16> to vector<64x64xbf16>
    %cst_7 = arith.constant dense<0.000000e+00> : vector<10x64xf32>
    %8 = tpu.matmul %1, %7, %cst_7 {dimension_numbers = #tpu.dot_dimension_numbers<[1], [0], [0], [1], [0, 0, 1, 1], [], []>} : vector<10x64xbf16>, vector<64x64xbf16>, vector<10x64xf32> -> vector<10x64xf32>
    %9 = vector.extract_strided_slice %8 {offsets = [1, 0], sizes = [8, 64], strides = [1, 1]} : vector<10x64xf32> to vector<8x64xf32>
    %10 = arith.addf %5, %9 : vector<8x64xf32>
    %c2 = arith.constant 2 : index
    %c0_8 = arith.constant 0 : index
    %c0_9 = arith.constant 0 : index
    %11 = vector.load %arg3[%c2, %c0_8, %c0_9] : memref<3x64x64xbf16, #tpu.memory_space<vmem>>, vector<1x64x64xbf16>
    %12 = vector.shape_cast %11 : vector<1x64x64xbf16> to vector<64x64xbf16>
    %cst_10 = arith.constant dense<0.000000e+00> : vector<10x64xf32>
    %13 = tpu.matmul %1, %12, %cst_10 {dimension_numbers = #tpu.dot_dimension_numbers<[1], [0], [0], [1], [0, 0, 1, 1], [], []>} : vector<10x64xbf16>, vector<64x64xbf16>, vector<10x64xf32> -> vector<10x64xf32>
    %14 = vector.extract_strided_slice %13 {offsets = [2, 0], sizes = [8, 64], strides = [1, 1]} : vector<10x64xf32> to vector<8x64xf32>
    %15 = arith.addf %10, %14 : vector<8x64xf32>
    %c0_11 = arith.constant 0 : index
    %c0_12 = arith.constant 0 : index
    %c0_13 = arith.constant 0 : index
    %16 = vector.load %arg2[%c0_11, %c0_12, %c0_13] : memref<1x10x64xbf16, #tpu.memory_space<vmem>>, vector<1x10x64xbf16>
    %17 = vector.shape_cast %16 : vector<1x10x64xbf16> to vector<10x64xbf16>
    %c0_14 = arith.constant 0 : index
    %c0_15 = arith.constant 0 : index
    %c0_16 = arith.constant 0 : index
    %18 = vector.load %arg4[%c0_14, %c0_15, %c0_16] : memref<3x64x64xbf16, #tpu.memory_space<vmem>>, vector<1x64x64xbf16>
    %19 = vector.shape_cast %18 : vector<1x64x64xbf16> to vector<64x64xbf16>
    %cst_17 = arith.constant dense<0.000000e+00> : vector<10x64xf32>
    %20 = tpu.matmul %17, %19, %cst_17 {dimension_numbers = #tpu.dot_dimension_numbers<[1], [0], [0], [1], [0, 0, 1, 1], [], []>} : vector<10x64xbf16>, vector<64x64xbf16>, vector<10x64xf32> -> vector<10x64xf32>
    %21 = vector.extract_strided_slice %20 {offsets = [0, 0], sizes = [8, 64], strides = [1, 1]} : vector<10x64xf32> to vector<8x64xf32>
    %22 = arith.addf %15, %21 : vector<8x64xf32>
    %c1_18 = arith.constant 1 : index
    %c0_19 = arith.constant 0 : index
    %c0_20 = arith.constant 0 : index
    %23 = vector.load %arg4[%c1_18, %c0_19, %c0_20] : memref<3x64x64xbf16, #tpu.memory_space<vmem>>, vector<1x64x64xbf16>
    %24 = vector.shape_cast %23 : vector<1x64x64xbf16> to vector<64x64xbf16>
    %cst_21 = arith.constant dense<0.000000e+00> : vector<10x64xf32>
    %25 = tpu.matmul %17, %24, %cst_21 {dimension_numbers = #tpu.dot_dimension_numbers<[1], [0], [0], [1], [0, 0, 1, 1], [], []>} : vector<10x64xbf16>, vector<64x64xbf16>, vector<10x64xf32> -> vector<10x64xf32>
    %26 = vector.extract_strided_slice %25 {offsets = [1, 0], sizes = [8, 64], strides = [1, 1]} : vector<10x64xf32> to vector<8x64xf32>
    %27 = arith.addf %22, %26 : vector<8x64xf32>
    %c2_22 = arith.constant 2 : index
    %c0_23 = arith.constant 0 : index
    %c0_24 = arith.constant 0 : index
    %28 = vector.load %arg4[%c2_22, %c0_23, %c0_24] : memref<3x64x64xbf16, #tpu.memory_space<vmem>>, vector<1x64x64xbf16>
    %29 = vector.shape_cast %28 : vector<1x64x64xbf16> to vector<64x64xbf16>
    %cst_25 = arith.constant dense<0.000000e+00> : vector<10x64xf32>
    %30 = tpu.matmul %17, %29, %cst_25 {dimension_numbers = #tpu.dot_dimension_numbers<[1], [0], [0], [1], [0, 0, 1, 1], [], []>} : vector<10x64xbf16>, vector<64x64xbf16>, vector<10x64xf32> -> vector<10x64xf32>
    %31 = vector.extract_strided_slice %30 {offsets = [2, 0], sizes = [8, 64], strides = [1, 1]} : vector<10x64xf32> to vector<8x64xf32>
    %32 = arith.addf %27, %31 : vector<8x64xf32>
    %c0_26 = arith.constant 0 : index
    %c0_27 = arith.constant 0 : index
    %33 = vector.load %arg5[%c0_26, %c0_27] : memref<1x64xf32, #tpu.memory_space<vmem>>, vector<1x64xf32>
    %34 = vector.broadcast %33 : vector<1x64xf32> to vector<8x64xf32>
    %35 = arith.addf %32, %34 : vector<8x64xf32>
    %cst_28 = arith.constant 0.000000e+00 : f32
    %36 = vector.broadcast %cst_28 : f32 to vector<8x64xf32>
    %37 = arith.maximumf %35, %36 : vector<8x64xf32>
    %38 = arith.truncf %37 : vector<8x64xf32> to vector<8x64xbf16>
    %c0_29 = arith.constant 0 : index
    %c0_30 = arith.constant 0 : index
    %c0_31 = arith.constant 0 : index
    %39 = vector.load %arg6[%c0_29, %c0_30, %c0_31] : memref<1x8x64xbf16, #tpu.memory_space<vmem>>, vector<1x8x64xbf16>
    %40 = vector.shape_cast %39 : vector<1x8x64xbf16> to vector<8x64xbf16>
    %41 = vector.shape_cast %38 : vector<8x64xbf16> to vector<1x8x64xbf16>
    tpu.vector_store %arg6[%c0_29, %c0_30, %c0_31], %41 {strides = array<i32>} : memref<1x8x64xbf16, #tpu.memory_space<vmem>>, vector<1x8x64xbf16>,
    return
  }
  func.func @transform_0(%arg0: i32) -> (i32, i32, i32) {
    %c0_i32 = arith.constant 0 : i32
    %c0_i32_0 = arith.constant 0 : i32
    %c0_i32_1 = arith.constant 0 : i32
    return %arg0, %c0_i32, %c0_i32_0 : i32, i32, i32
  }
  func.func @transform_1(%arg0: i32) -> (i32, i32, i32) {
    %c0_i32 = arith.constant 0 : i32
    %c0_i32_0 = arith.constant 0 : i32
    %c0_i32_1 = arith.constant 0 : i32
    return %arg0, %c0_i32, %c0_i32_0 : i32, i32, i32
  }
  func.func @transform_2(%arg0: i32) -> (i32, i32, i32) {
    %c0_i32 = arith.constant 0 : i32
    %c0_i32_0 = arith.constant 0 : i32
    %c0_i32_1 = arith.constant 0 : i32
    %c0_i32_2 = arith.constant 0 : i32
    return %c0_i32, %c0_i32_0, %c0_i32_1 : i32, i32, i32
  }
  func.func @transform_3(%arg0: i32) -> (i32, i32, i32) {
    %c0_i32 = arith.constant 0 : i32
    %c0_i32_0 = arith.constant 0 : i32
    %c0_i32_1 = arith.constant 0 : i32
    %c0_i32_2 = arith.constant 0 : i32
    return %c0_i32, %c0_i32_0, %c0_i32_1 : i32, i32, i32
  }
  func.func @transform_4(%arg0: i32) -> (i32, i32) {
    %c0_i32 = arith.constant 0 : i32
    %c0_i32_0 = arith.constant 0 : i32
    %c0_i32_1 = arith.constant 0 : i32
    return %c0_i32, %c0_i32_0 : i32, i32
  }
  func.func @transform_5(%arg0: i32) -> (i32, i32, i32) {
    %c0_i32 = arith.constant 0 : i32
    %c0_i32_0 = arith.constant 0 : i32
    %c0_i32_1 = arith.constant 0 : i32
    return %arg0, %c0_i32, %c0_i32_0 : i32, i32, i32
  }
}

module attributes {stable_mosaic.version = 11 : i64} {
  func.func @_matmul_bias_relu_kernel(%arg0: i32, %arg1: memref<1x8x64xbf16, #tpu.memory_space<vmem>>, %arg2: memref<64x256xbf16, #tpu.memory_space<vmem>>, %arg3: memref<1x256xf32, #tpu.memory_space<vmem>>, %arg4: memref<1x8x256xbf16, #tpu.memory_space<vmem>>) attributes {dimension_semantics = [#tpu.dimension_semantics<parallel>], iteration_bounds = array<i64: 2>, scalar_prefetch = 0 : i64, scratch_operands = 0 : i64, tpu.core_type = #tpu.core_type<tc>, window_params = [{transform_indices = @transform_0, window_bounds = array<i64: 1, 8, 64>}, {pipeline_mode = #tpu.pipeline_mode<synchronous>, transform_indices = @transform_1, window_bounds = array<i64: 64, 256>}, {pipeline_mode = #tpu.pipeline_mode<synchronous>, transform_indices = @transform_2, window_bounds = array<i64: 1, 256>}, {transform_indices = @transform_3, window_bounds = array<i64: 1, 8, 256>}]} {
    %c0 = arith.constant 0 : index
    %c0_0 = arith.constant 0 : index
    %c0_1 = arith.constant 0 : index
    %0 = vector.load %arg1[%c0, %c0_0, %c0_1] : memref<1x8x64xbf16, #tpu.memory_space<vmem>>, vector<1x8x64xbf16>
    %1 = vector.shape_cast %0 : vector<1x8x64xbf16> to vector<8x64xbf16>
    %c0_2 = arith.constant 0 : index
    %c0_3 = arith.constant 0 : index
    %2 = vector.load %arg2[%c0_2, %c0_3] : memref<64x256xbf16, #tpu.memory_space<vmem>>, vector<64x256xbf16>
    %cst = arith.constant dense<0.000000e+00> : vector<8x256xf32>
    %3 = tpu.matmul %1, %2, %cst {dimension_numbers = #tpu.dot_dimension_numbers<[1], [0], [0], [1], [0, 0, 1, 1], [], []>} : vector<8x64xbf16>, vector<64x256xbf16>, vector<8x256xf32> -> vector<8x256xf32>
    %c0_4 = arith.constant 0 : index
    %c0_5 = arith.constant 0 : index
    %4 = vector.load %arg3[%c0_4, %c0_5] : memref<1x256xf32, #tpu.memory_space<vmem>>, vector<1x256xf32>
    %5 = vector.broadcast %4 : vector<1x256xf32> to vector<8x256xf32>
    %6 = arith.addf %3, %5 : vector<8x256xf32>
    %cst_6 = arith.constant 0.000000e+00 : f32
    %7 = vector.broadcast %cst_6 : f32 to vector<8x256xf32>
    %8 = arith.maximumf %6, %7 : vector<8x256xf32>
    %9 = arith.truncf %8 : vector<8x256xf32> to vector<8x256xbf16>
    %c0_7 = arith.constant 0 : index
    %c0_8 = arith.constant 0 : index
    %c0_9 = arith.constant 0 : index
    %10 = vector.load %arg4[%c0_7, %c0_8, %c0_9] : memref<1x8x256xbf16, #tpu.memory_space<vmem>>, vector<1x8x256xbf16>
    %11 = vector.shape_cast %10 : vector<1x8x256xbf16> to vector<8x256xbf16>
    %12 = vector.shape_cast %9 : vector<8x256xbf16> to vector<1x8x256xbf16>
    tpu.vector_store %arg4[%c0_7, %c0_8, %c0_9], %12 {strides = array<i32>} : memref<1x8x256xbf16, #tpu.memory_space<vmem>>, vector<1x8x256xbf16>,
    return
  }
  func.func @transform_0(%arg0: i32) -> (i32, i32, i32) {
    %c0_i32 = arith.constant 0 : i32
    %c0_i32_0 = arith.constant 0 : i32
    %c0_i32_1 = arith.constant 0 : i32
    return %arg0, %c0_i32, %c0_i32_0 : i32, i32, i32
  }
  func.func @transform_1(%arg0: i32) -> (i32, i32) {
    %c0_i32 = arith.constant 0 : i32
    %c0_i32_0 = arith.constant 0 : i32
    %c0_i32_1 = arith.constant 0 : i32
    return %c0_i32, %c0_i32_0 : i32, i32
  }
  func.func @transform_2(%arg0: i32) -> (i32, i32) {
    %c0_i32 = arith.constant 0 : i32
    %c0_i32_0 = arith.constant 0 : i32
    %c0_i32_1 = arith.constant 0 : i32
    return %c0_i32, %c0_i32_0 : i32, i32
  }
  func.func @transform_3(%arg0: i32) -> (i32, i32, i32) {
    %c0_i32 = arith.constant 0 : i32
    %c0_i32_0 = arith.constant 0 : i32
    %c0_i32_1 = arith.constant 0 : i32
    return %arg0, %c0_i32, %c0_i32_0 : i32, i32, i32
  }
}

module attributes {stable_mosaic.version = 11 : i64} {
  func.func @_conv3x3_rows_kernel(%arg0: i32, %arg1: memref<1x18x128xbf16, #tpu.memory_space<vmem>>, %arg2: memref<1x18x128xbf16, #tpu.memory_space<vmem>>, %arg3: memref<3x128x128xbf16, #tpu.memory_space<vmem>>, %arg4: memref<3x128x128xbf16, #tpu.memory_space<vmem>>, %arg5: memref<1x128xf32, #tpu.memory_space<vmem>>, %arg6: memref<1x16x128xbf16, #tpu.memory_space<vmem>>) attributes {dimension_semantics = [#tpu.dimension_semantics<parallel>], iteration_bounds = array<i64: 2>, scalar_prefetch = 0 : i64, scratch_operands = 0 : i64, tpu.core_type = #tpu.core_type<tc>, window_params = [{transform_indices = @transform_0, window_bounds = array<i64: 1, 18, 128>}, {transform_indices = @transform_1, window_bounds = array<i64: 1, 18, 128>}, {pipeline_mode = #tpu.pipeline_mode<synchronous>, transform_indices = @transform_2, window_bounds = array<i64: 3, 128, 128>}, {pipeline_mode = #tpu.pipeline_mode<synchronous>, transform_indices = @transform_3, window_bounds = array<i64: 3, 128, 128>}, {pipeline_mode = #tpu.pipeline_mode<synchronous>, transform_indices = @transform_4, window_bounds = array<i64: 1, 128>}, {transform_indices = @transform_5, window_bounds = array<i64: 1, 16, 128>}]} {
    %c0 = arith.constant 0 : index
    %c0_0 = arith.constant 0 : index
    %c0_1 = arith.constant 0 : index
    %0 = vector.load %arg1[%c0, %c0_0, %c0_1] : memref<1x18x128xbf16, #tpu.memory_space<vmem>>, vector<1x18x128xbf16>
    %1 = vector.shape_cast %0 : vector<1x18x128xbf16> to vector<18x128xbf16>
    %c0_2 = arith.constant 0 : index
    %c0_3 = arith.constant 0 : index
    %c0_4 = arith.constant 0 : index
    %2 = vector.load %arg3[%c0_2, %c0_3, %c0_4] : memref<3x128x128xbf16, #tpu.memory_space<vmem>>, vector<1x128x128xbf16>
    %3 = vector.shape_cast %2 : vector<1x128x128xbf16> to vector<128x128xbf16>
    %cst = arith.constant dense<0.000000e+00> : vector<18x128xf32>
    %4 = tpu.matmul %1, %3, %cst {dimension_numbers = #tpu.dot_dimension_numbers<[1], [0], [0], [1], [0, 0, 1, 1], [], []>} : vector<18x128xbf16>, vector<128x128xbf16>, vector<18x128xf32> -> vector<18x128xf32>
    %5 = vector.extract_strided_slice %4 {offsets = [0, 0], sizes = [16, 128], strides = [1, 1]} : vector<18x128xf32> to vector<16x128xf32>
    %c1 = arith.constant 1 : index
    %c0_5 = arith.constant 0 : index
    %c0_6 = arith.constant 0 : index
    %6 = vector.load %arg3[%c1, %c0_5, %c0_6] : memref<3x128x128xbf16, #tpu.memory_space<vmem>>, vector<1x128x128xbf16>
    %7 = vector.shape_cast %6 : vector<1x128x128xbf16> to vector<128x128xbf16>
    %cst_7 = arith.constant dense<0.000000e+00> : vector<18x128xf32>
    %8 = tpu.matmul %1, %7, %cst_7 {dimension_numbers = #tpu.dot_dimension_numbers<[1], [0], [0], [1], [0, 0, 1, 1], [], []>} : vector<18x128xbf16>, vector<128x128xbf16>, vector<18x128xf32> -> vector<18x128xf32>
    %9 = vector.extract_strided_slice %8 {offsets = [1, 0], sizes = [16, 128], strides = [1, 1]} : vector<18x128xf32> to vector<16x128xf32>
    %10 = arith.addf %5, %9 : vector<16x128xf32>
    %c2 = arith.constant 2 : index
    %c0_8 = arith.constant 0 : index
    %c0_9 = arith.constant 0 : index
    %11 = vector.load %arg3[%c2, %c0_8, %c0_9] : memref<3x128x128xbf16, #tpu.memory_space<vmem>>, vector<1x128x128xbf16>
    %12 = vector.shape_cast %11 : vector<1x128x128xbf16> to vector<128x128xbf16>
    %cst_10 = arith.constant dense<0.000000e+00> : vector<18x128xf32>
    %13 = tpu.matmul %1, %12, %cst_10 {dimension_numbers = #tpu.dot_dimension_numbers<[1], [0], [0], [1], [0, 0, 1, 1], [], []>} : vector<18x128xbf16>, vector<128x128xbf16>, vector<18x128xf32> -> vector<18x128xf32>
    %14 = vector.extract_strided_slice %13 {offsets = [2, 0], sizes = [16, 128], strides = [1, 1]} : vector<18x128xf32> to vector<16x128xf32>
    %15 = arith.addf %10, %14 : vector<16x128xf32>
    %c0_11 = arith.constant 0 : index
    %c0_12 = arith.constant 0 : index
    %c0_13 = arith.constant 0 : index
    %16 = vector.load %arg2[%c0_11, %c0_12, %c0_13] : memref<1x18x128xbf16, #tpu.memory_space<vmem>>, vector<1x18x128xbf16>
    %17 = vector.shape_cast %16 : vector<1x18x128xbf16> to vector<18x128xbf16>
    %c0_14 = arith.constant 0 : index
    %c0_15 = arith.constant 0 : index
    %c0_16 = arith.constant 0 : index
    %18 = vector.load %arg4[%c0_14, %c0_15, %c0_16] : memref<3x128x128xbf16, #tpu.memory_space<vmem>>, vector<1x128x128xbf16>
    %19 = vector.shape_cast %18 : vector<1x128x128xbf16> to vector<128x128xbf16>
    %cst_17 = arith.constant dense<0.000000e+00> : vector<18x128xf32>
    %20 = tpu.matmul %17, %19, %cst_17 {dimension_numbers = #tpu.dot_dimension_numbers<[1], [0], [0], [1], [0, 0, 1, 1], [], []>} : vector<18x128xbf16>, vector<128x128xbf16>, vector<18x128xf32> -> vector<18x128xf32>
    %21 = vector.extract_strided_slice %20 {offsets = [0, 0], sizes = [16, 128], strides = [1, 1]} : vector<18x128xf32> to vector<16x128xf32>
    %22 = arith.addf %15, %21 : vector<16x128xf32>
    %c1_18 = arith.constant 1 : index
    %c0_19 = arith.constant 0 : index
    %c0_20 = arith.constant 0 : index
    %23 = vector.load %arg4[%c1_18, %c0_19, %c0_20] : memref<3x128x128xbf16, #tpu.memory_space<vmem>>, vector<1x128x128xbf16>
    %24 = vector.shape_cast %23 : vector<1x128x128xbf16> to vector<128x128xbf16>
    %cst_21 = arith.constant dense<0.000000e+00> : vector<18x128xf32>
    %25 = tpu.matmul %17, %24, %cst_21 {dimension_numbers = #tpu.dot_dimension_numbers<[1], [0], [0], [1], [0, 0, 1, 1], [], []>} : vector<18x128xbf16>, vector<128x128xbf16>, vector<18x128xf32> -> vector<18x128xf32>
    %26 = vector.extract_strided_slice %25 {offsets = [1, 0], sizes = [16, 128], strides = [1, 1]} : vector<18x128xf32> to vector<16x128xf32>
    %27 = arith.addf %22, %26 : vector<16x128xf32>
    %c2_22 = arith.constant 2 : index
    %c0_23 = arith.constant 0 : index
    %c0_24 = arith.constant 0 : index
    %28 = vector.load %arg4[%c2_22, %c0_23, %c0_24] : memref<3x128x128xbf16, #tpu.memory_space<vmem>>, vector<1x128x128xbf16>
    %29 = vector.shape_cast %28 : vector<1x128x128xbf16> to vector<128x128xbf16>
    %cst_25 = arith.constant dense<0.000000e+00> : vector<18x128xf32>
    %30 = tpu.matmul %17, %29, %cst_25 {dimension_numbers = #tpu.dot_dimension_numbers<[1], [0], [0], [1], [0, 0, 1, 1], [], []>} : vector<18x128xbf16>, vector<128x128xbf16>, vector<18x128xf32> -> vector<18x128xf32>
    %31 = vector.extract_strided_slice %30 {offsets = [2, 0], sizes = [16, 128], strides = [1, 1]} : vector<18x128xf32> to vector<16x128xf32>
    %32 = arith.addf %27, %31 : vector<16x128xf32>
    %c0_26 = arith.constant 0 : index
    %c0_27 = arith.constant 0 : index
    %33 = vector.load %arg5[%c0_26, %c0_27] : memref<1x128xf32, #tpu.memory_space<vmem>>, vector<1x128xf32>
    %34 = vector.broadcast %33 : vector<1x128xf32> to vector<16x128xf32>
    %35 = arith.addf %32, %34 : vector<16x128xf32>
    %cst_28 = arith.constant 0.000000e+00 : f32
    %36 = vector.broadcast %cst_28 : f32 to vector<16x128xf32>
    %37 = arith.maximumf %35, %36 : vector<16x128xf32>
    %38 = arith.truncf %37 : vector<16x128xf32> to vector<16x128xbf16>
    %c0_29 = arith.constant 0 : index
    %c0_30 = arith.constant 0 : index
    %c0_31 = arith.constant 0 : index
    %39 = vector.load %arg6[%c0_29, %c0_30, %c0_31] : memref<1x16x128xbf16, #tpu.memory_space<vmem>>, vector<1x16x128xbf16>
    %40 = vector.shape_cast %39 : vector<1x16x128xbf16> to vector<16x128xbf16>
    %41 = vector.shape_cast %38 : vector<16x128xbf16> to vector<1x16x128xbf16>
    tpu.vector_store %arg6[%c0_29, %c0_30, %c0_31], %41 {strides = array<i32>} : memref<1x16x128xbf16, #tpu.memory_space<vmem>>, vector<1x16x128xbf16>,
    return
  }
  func.func @transform_0(%arg0: i32) -> (i32, i32, i32) {
    %c0_i32 = arith.constant 0 : i32
    %c0_i32_0 = arith.constant 0 : i32
    %c0_i32_1 = arith.constant 0 : i32
    return %arg0, %c0_i32, %c0_i32_0 : i32, i32, i32
  }
  func.func @transform_1(%arg0: i32) -> (i32, i32, i32) {
    %c0_i32 = arith.constant 0 : i32
    %c0_i32_0 = arith.constant 0 : i32
    %c0_i32_1 = arith.constant 0 : i32
    return %arg0, %c0_i32, %c0_i32_0 : i32, i32, i32
  }
  func.func @transform_2(%arg0: i32) -> (i32, i32, i32) {
    %c0_i32 = arith.constant 0 : i32
    %c0_i32_0 = arith.constant 0 : i32
    %c0_i32_1 = arith.constant 0 : i32
    %c0_i32_2 = arith.constant 0 : i32
    return %c0_i32, %c0_i32_0, %c0_i32_1 : i32, i32, i32
  }
  func.func @transform_3(%arg0: i32) -> (i32, i32, i32) {
    %c0_i32 = arith.constant 0 : i32
    %c0_i32_0 = arith.constant 0 : i32
    %c0_i32_1 = arith.constant 0 : i32
    %c0_i32_2 = arith.constant 0 : i32
    return %c0_i32, %c0_i32_0, %c0_i32_1 : i32, i32, i32
  }
  func.func @transform_4(%arg0: i32) -> (i32, i32) {
    %c0_i32 = arith.constant 0 : i32
    %c0_i32_0 = arith.constant 0 : i32
    %c0_i32_1 = arith.constant 0 : i32
    return %c0_i32, %c0_i32_0 : i32, i32
  }
  func.func @transform_5(%arg0: i32) -> (i32, i32, i32) {
    %c0_i32 = arith.constant 0 : i32
    %c0_i32_0 = arith.constant 0 : i32
    %c0_i32_1 = arith.constant 0 : i32
    return %arg0, %c0_i32, %c0_i32_0 : i32, i32, i32
  }
}

</mosaic_0001>

<bundles_post_ra>
// kernel: _lambda_.12
= control target key start
LH: loop header
LB: loop body
LE: loop exit
PB: predicated region body
PF: predicated region fallthrough
CT: control target
= control target key end

     0   :  { %8 = vsyncpa [#allocation3], 0  ;;  %s472_s12 = smov 0   ;;  %s495_s0 = inlined_call_operand.vmem [shape: bf16[2,4,128], index: 0, kind: input, shape index: {}]   ;;  %s496_s1 = inlined_call_operand.hbm [shape: bf16[128,32], index: 1, kind: input, shape index: {}]   ;;  %s497_s2 = inlined_call_operand.vmem [shape: f32[1,32], index: 2, kind: input, shape index: {}]   ;;  %s498_s3 = inlined_call_operand.vmem [shape: bf16[2,4,32], index: 3, kind: output, shape index: {}]  }
   0x1 LB: > { %s124_s15 = sshll.u32 %s496_s1, 4  ;;  %s334_s16 = sadd.s32 4294967295, %s447_s12   ;;  %s447_s12 = sphi %s472_s12, %s14_s12   ;;  %s125_s15 = int_to_ptr.hbm [resolvable:$true] %s124_s15 }
   0x2   : > { %p336_p0 = scmp.ge.s32.totalorder %s447_s12, 1  ;;  %p113_p1 = scmp.lt.s32.totalorder %s447_s12, 3 }
   0x3   : > { %p393_p2 = scmp.eq.s32.totalorder %s334_s16, 0  ;;  %s449_s17 = smov [#allocation2]  }
   0x4   : > { %p114_p3 = pnand %p336_p0, %p113_p1  ;;  %s126_s18 = sshll.u32 %s449_s17, 4  ;;  %s127_s18 = int_to_ptr.vmem [resolvable:$true] %s126_s18 }
   0x5   : > { %s450_s19 = smov 64   ;;  %s451_s20 = smov 4  }
   0x6   : > { %p389_p4 = pneg %p114_p3  ;;  %152 = sbr.rel (%p114_p3) target bundleno = 178 (0xb2), region = 32 }
   0x8   : > { %p390_p5 = pnand %p393_p2, %p389_p4 }
   0xa   : > { %392 = dma.hbm_to_vmem [thread:$0]  (!%p390_p5), %s125_s15, 1024, %s127_s18, [#allocation3], %s450_s19, %s450_s19, %s451_s20  }
   0xb   : > { %442 = dma.done.wait (%p393_p2), [#allocation3], 1024  }
   0xc   : > { %444 = vsyncadd (%p393_p2), [#allocation3], 4294966272  ;;  %v384_v0 = vld [vmem:[#allocation2 + $0x38] sm:$0xff]  ;;  %v383_v1 = vld [vmem:[#allocation2 + $0x30] sm:$0xff]  ;;  %p175_p6 = scmp.lt.s32.totalorder %s334_s16, 1  ;;  %vm267_vm0 = vcmask 254976  }
   0xd   : > { %252 = vmatpush.bf16.msra.mxu0 %v384_v0  ;;  %v382_v2 = vld [vmem:[#allocation2 + $0x28] sm:$0xff]  ;;  %v381_v3 = vld [vmem:[#allocation2 + $0x20] sm:$0xff]  ;;  %v380_v4 = vld [vmem:[#allocation2 + $0x18] sm:$0xff] }
   0xe   : > { %v379_v5 = vld [vmem:[#allocation2 + $0x10] sm:$0xff]  ;;  %s500_s16 = smov (!%p175_p6, %s334_s16), 1  ;;  %v378_v6 = vld [vmem:[#allocation2 + $0x8] sm:$0xff]  ;;  %v377_v7 = vld [vmem:[#allocation2] sm:$0xff] }
   0xf   : > { %s341_s21 = sshll.u32 %s500_s16, 1  ;;  %v406_v9 = vld [vmem:[%s497_s2] ss:$0 sm:$0xff] }
  0x10   : > { %s178_s24 = scalar_lea.vmem %s495_s0, %s341_s21  ;;  %s182_s29 = scalar_lea.vmem %s498_s3, %s341_s21 }
  0x11   : > { %253 = vmatpush.bf16.msra.mxu0 %v383_v1  ;;  %v183_v8 = vld [vmem:[%s178_s24] sm:$0x3] }
  0x15   : > { %254 = vmatpush.bf16.msra.mxu0 %v382_v2 }
  0x19   : > { %255 = vmatpush.bf16.msra.mxu0 %v381_v3 }
  0x1d   : > { %256 = vmatpush.bf16.msra.mxu0 %v380_v4 }
  0x21   : > { %257 = vmatpush.bf16.msra.mxu0 %v379_v5 }
  0x25   : > { %258 = vmatpush.bf16.msra.mxu0 %v378_v6 }
  0x29   : > { %259 = vmatpush.bf16.msra.mxu0 %v377_v7 }
  0x2c   : > { %260 = vmatmul.bf16.vlgmr.msra.gmra.mxu0 %v183_v8 }
  0xa9   : > { %v261_v10 = vpop.f32.mrf.mxu0 }
  0xaa   : > { %v262_v11 = vadd.f32 %v406_v9, %v261_v10 }
  0xac   : > { %v265_v12 = vmax.f32 %v262_v11, 0.0 }
  0xae   : > { %v266_v13 = vpack.c.bf16 %v265_v12, %v265_v12 }
  0xb0   : > { %268 = vst.msk [vmem:[%s182_s29] sm:$0x3] %vm267_vm0, %v266_v13 }
  0xb1   : > { %v263_v14 = vpop.f32.mrf.mxu0 }
  0xb2 PF: > { %s14_s12 = sadd.s32 1, %s447_s12  }
  0xb3   : > { %p11_p7 = scmp.ge.s32.totalorder %s14_s12, 4  }
  0xb5   :  { %13 = sbr.rel (!%p11_p7) target bundleno = 1 (0x1), region = 67 }
  0xba   :  { %288 = vsyncpa [#allocation3], 1 }
  0xbb   :  { %290 = vsyncpa [#allocation3 + $0x1], 1 }

// kernel: _lambda_.10
= control target key start
LH: loop header
LB: loop body
LE: loop exit
PB: predicated region body
PF: predicated region fallthrough
CT: control target
= control target key end

     0   :  { %s520_s12 = smov 0   ;;  %s592_s0 = inlined_call_operand.vmem [shape: bf16[2,8,256], index: 0, kind: input, shape index: {}]   ;;  %s593_s1 = inlined_call_operand.vmem [shape: bf16[256,64], index: 1, kind: input, shape index: {}]   ;;  %s594_s2 = inlined_call_operand.vmem [shape: f32[1,64], index: 2, kind: input, shape index: {}]   ;;  %s595_s3 = inlined_call_operand.vmem [shape: bf16[2,8,64], index: 3, kind: output, shape index: {}]  }
   0x1 LB: > { %s392_s13 = sadd.s32 4294967295, %s498_s12   ;;  %p396_p0 = scmp.ge.s32.totalorder %s498_s12, 1  ;;  %s498_s12 = sphi %s520_s12, %s13_s12  }
   0x2   : > { %p137_p1 = scmp.lt.s32.totalorder %s498_s12, 3 }
   0x4   : > { %p138_p2 = pnand %p396_p0, %p137_p1 }
   0x5   : > { %p160_p3 = scmp.lt.s32.totalorder (!%p138_p2), %s392_s13, 1 }
   0x6   : > { %141 = sbr.rel (%p138_p2) target bundleno = 178 (0xb2), region = 32 }
   0xb   : > { %v474_v0 = vld [vmem:[%s593_s1 + $0x38] sm:$0xff]  ;;  %v473_v2 = vld [vmem:[%s593_s1 + $0x30] sm:$0xff]  ;;  %v472_v4 = vld [vmem:[%s593_s1 + $0x28] sm:$0xff]  ;;  %s597_s13 = smov (!%p160_p3, %s392_s13), 1  ;;  %vm337_vm0 = vcmask 519168  }
   0xc   : > { %v482_v1 = vld [vmem:[%s593_s1 + $0x78] sm:$0xff]  ;;  %309 = vmatpush.bf16.msra.mxu0 %v474_v0  ;;  %v481_v3 = vld [vmem:[%s593_s1 + $0x70] sm:$0xff]  ;;  %v480_v5 = vld [vmem:[%s593_s1 + $0x68] sm:$0xff]  ;;  %s466_s7 = sshll.u32 %s597_s13, 3  ;;  %s399_s27 = sshll.u32 %s597_s13, 2 }
   0xd   : > { %322 = vmatpush.bf16.msra.mxu1 %v482_v1  ;;  %v471_v6 = vld [vmem:[%s593_s1 + $0x20] sm:$0xff]  ;;  %v470_v8 = vld [vmem:[%s593_s1 + $0x18] sm:$0xff]  ;;  %v469_v10 = vld [vmem:[%s593_s1 + $0x10] sm:$0xff]  ;;  %s164_s16 = scalar_lea.vmem %s592_s0, %s466_s7  ;;  %s168_s30 = scalar_lea.vmem %s595_s3, %s399_s27 }
   0xe   : > { %v479_v7 = vld [vmem:[%s593_s1 + $0x60] sm:$0xff]  ;;  %v478_v9 = vld [vmem:[%s593_s1 + $0x58] sm:$0xff]  ;;  %v477_v11 = vld [vmem:[%s593_s1 + $0x50] sm:$0xff] }
   0xf   : > { %v468_v12 = vld [vmem:[%s593_s1 + $0x8] sm:$0xff]  ;;  %v169_v14 = vld [vmem:[%s164_s16] sm:$0xff] }
  0x10   : > { %310 = vmatpush.bf16.msra.mxu0 %v473_v2  ;;  %v476_v13 = vld [vmem:[%s593_s1 + $0x48] sm:$0xff]  ;;  %v207_v15 = vunpack.c.l.b16 %v169_v14  ;;  %v208_v16 = vunpack.c.h.b16 %v169_v14  ;;  %v467_v17 = vld [vmem:[%s593_s1] sm:$0xff] }
  0x11   : > { %323 = vmatpush.bf16.msra.mxu1 %v481_v3  ;;  %v475_v18 = vld [vmem:[%s593_s1 + $0x40] sm:$0xff] }
  0x12   : > { %v209_v19 = vpack.c.b16 %v207_v15, %v207_v15  ;;  %v210_v20 = vpack.c.b16 %v208_v16, %v208_v16  ;;  %v491_v21 = vld [vmem:[%s594_s2] ss:$0 sm:$0xff] }
  0x14   : > { %311 = vmatpush.bf16.msra.mxu0 %v472_v4 }
  0x15   : > { %324 = vmatpush.bf16.msra.mxu1 %v480_v5 }
  0x18   : > { %312 = vmatpush.bf16.msra.mxu0 %v471_v6 }
  0x19   : > { %325 = vmatpush.bf16.msra.mxu1 %v479_v7 }
  0x1c   : > { %313 = vmatpush.bf16.msra.mxu0 %v470_v8 }
  0x1d   : > { %326 = vmatpush.bf16.msra.mxu1 %v478_v9 }
  0x20   : > { %314 = vmatpush.bf16.msra.mxu0 %v469_v10 }
  0x21   : > { %327 = vmatpush.bf16.msra.mxu1 %v477_v11 }
  0x24   : > { %315 = vmatpush.bf16.msra.mxu0 %v468_v12 }
  0x25   : > { %328 = vmatpush.bf16.msra.mxu1 %v476_v13 }
  0x28   : > { %316 = vmatpush.bf16.msra.mxu0 %v467_v17 }
  0x29   : > { %329 = vmatpush.bf16.msra.mxu1 %v475_v18 }
  0x2b   : > { %317 = vmatmul.bf16.vlgmr.msra.gmra.mxu0 %v209_v19 }
  0x2c   : > { %330 = vmatmul.bf16.vlgmr.msra.gmra.mxu1 %v210_v20 }
  0xa8   : > { %v318_v22 = vpop.f32.mrf.mxu0 }
  0xa9   : > { %v331_v23 = vpop.f32.mrf.mxu1  ;;  %v319_v24 = vadd.f32 %v491_v21, %v318_v22 }
  0xab   : > { %v332_v25 = vadd.f32 %v331_v23, %v319_v24 }
  0xad   : > { %v335_v26 = vmax.f32 %v332_v25, 0.0 }
  0xaf   : > { %v336_v27 = vpack.c.bf16 %v335_v26, %v335_v26 }
  0xb0   : > { %v320_v28 = vpop.f32.mrf.mxu0 }
  0xb1   : > { %v333_v29 = vpop.f32.mrf.mxu1  ;;  %338 = vst.msk [vmem:[%s168_s30] sm:$0xf] %vm337_vm0, %v336_v27 }
  0xb2 PF: > { %s13_s12 = sadd.s32 1, %s498_s12  }
  0xb3   : > { %p10_p4 = scmp.ge.s32.totalorder %s13_s12, 4  }
  0xb5   :  { %12 = sbr.rel (!%p10_p4) target bundleno = 1 (0x1), region = 62 }

// kernel: _lambda_.11
= control target key start
LH: loop header
LB: loop body
LE: loop exit
PB: predicated region body
PF: predicated region fallthrough
CT: control target
= control target key end

     0   :  { %s530_s12 = smov 0   ;;  %s590_s0 = inlined_call_operand.vmem [shape: bf16[2,10,64], index: 0, kind: input, shape index: {}]   ;;  %s591_s1 = inlined_call_operand.vmem [shape: bf16[3,64,64], index: 1, kind: input, shape index: {}]   ;;  %s592_s2 = inlined_call_operand.vmem [shape: f32[1,64], index: 2, kind: input, shape index: {}]   ;;  %s593_s3 = inlined_call_operand.vmem [shape: bf16[2,8,64], index: 3, kind: output, shape index: {}]  }
   0x1 LB: > { %s398_s13 = sadd.s32 4294967295, %s508_s12   ;;  %p402_p0 = scmp.ge.s32.totalorder %s508_s12, 1  ;;  %s508_s12 = sphi %s530_s12, %s13_s12  }
   0x2   : > { %p137_p1 = scmp.lt.s32.totalorder %s508_s12, 3 }
   0x4   : > { %p138_p2 = pnand %p402_p0, %p137_p1 }
   0x5   : > { %p160_p3 = scmp.lt.s32.totalorder (!%p138_p2), %s398_s13, 1 }
   0x6   : > { %141 = sbr.rel (%p138_p2) target bundleno = 180 (0xb4), region = 32 }
   0xb   : > { %v488_v0 = vld [vmem:[%s591_s1 + $0x38] sm:$0xff]  ;;  %v487_v3 = vld [vmem:[%s591_s1 + $0x30] sm:$0xff]  ;;  %s595_s13 = smov (!%p160_p3, %s398_s13), 1  ;;  %v486_v6 = vld [vmem:[%s591_s1 + $0x28] sm:$0xff]  ;;  %vm209_vm0 = vcmask 523264   ;;  %vm275_vm1 = vcmask 1046528  }
   0xc   : > { %v492_v1 = vld [vmem:[%s591_s1 + $0x58] sm:$0xff]  ;;  %263 = vmatpush.bf16.msra.mxu1 %v488_v0  ;;  %v491_v4 = vld [vmem:[%s591_s1 + $0x50] sm:$0xff]  ;;  %s479_s26 = sshll.u32 %s595_s13, 3  ;;  %v490_v7 = vld [vmem:[%s591_s1 + $0x48] sm:$0xff]  ;;  %vm330_vm2 = vcmask 1045504   ;;  %s405_s19 = sshll.u32 %s595_s13, 2 }
   0xd   : > { %v484_v2 = vld [vmem:[%s591_s1 + $0x18] sm:$0xff]  ;;  %318 = vmatpush.bf16.msra.mxu2 %v492_v1  ;;  %v483_v5 = vld [vmem:[%s591_s1 + $0x10] sm:$0xff]  ;;  %v482_v8 = vld [vmem:[%s591_s1 + $0x8] sm:$0xff]  ;;  %s164_s8 = scalar_lea.vmem %s590_s0, %s479_s26  ;;  %s168_s22 = scalar_lea.vmem %s593_s3, %s405_s19  ;;  %vm343_vm3 = vcmask 519168  }
   0xe   : > { %217 = vmatpush.bf16.msra.mxu0 %v484_v2  ;;  %v485_v9 = vld [vmem:[%s591_s1 + $0x20] sm:$0xff] }
   0xf   : > { %v489_v10 = vld [vmem:[%s591_s1 + $0x40] sm:$0xff] }
  0x10   : > { %264 = vmatpush.bf16.msra.mxu1 %v487_v3  ;;  %v408_v11 = vld [vmem:[%s164_s8] sm:$0xf]  ;;  %v480_v12 = vld [vmem:[%s164_s8] sm:$0x10] }
  0x11   : > { %319 = vmatpush.bf16.msra.mxu2 %v491_v4  ;;  %v481_v13 = vld [vmem:[%s591_s1] sm:$0xff]  ;;  %v409_v14 = vor.u32 %v480_v12, %v408_v11 }
  0x12   : > { %218 = vmatpush.bf16.msra.mxu0 %v483_v5  ;;  %v501_v27 = vld [vmem:[%s592_s2] ss:$0 sm:$0xff] }
  0x14   : > { %265 = vmatpush.bf16.msra.mxu1 %v486_v6 }
  0x15   : > { %320 = vmatpush.bf16.msra.mxu2 %v490_v7 }
  0x16   : > { %219 = vmatpush.bf16.msra.mxu0 %v482_v8 }
  0x18   : > { %266 = vmatpush.bf16.msra.mxu1 %v485_v9 }
  0x19   : > { %321 = vmatpush.bf16.msra.mxu2 %v489_v10 }
  0x1a   : > { %220 = vmatpush.bf16.msra.mxu0 %v481_v13 }
  0x1b   : > { %451 = vmatmul.msk.bf16.vlgmr.msra.gmra.mxu1 %vm209_vm0, %v409_v14 }
  0x1c   : > { %476 = vmatmul.msk.bf16.vlgmr.msra.gmra.mxu2 %vm209_vm0, %v409_v14 }
  0x1d   : > { %426 = vmatmul.msk.bf16.vlgmr.msra.gmra.mxu0 %vm209_vm0, %v409_v14 }
  0x98   : > { %v268_v15 = vpop.f32.mrf.mxu1 }
  0x99   : > { %v276_v21 = vrot.slane %v268_v15, 1 }
  0x9a   : > { %v222_v16 = vpop.f32.mrf.mxu0 }
  0x9f   : > { %v323_v17 = vpop.f32.mrf.mxu2 }
  0xa0   : > { %v270_v18 = vpop.f32.mrf.mxu1  ;;  %v331_v24 = vrot.slane %v323_v17, 2 }
  0xa1   : > { %v277_v19 = vrot.slane %v270_v18, 1 }
  0xa2   : > { %v224_v20 = vpop.f32.mrf.mxu0 }
  0xa3   : > { %v278_v22 = vsel %vm275_vm1, %v276_v21, %v277_v19 }
  0xa4   : > { %v280_v26 = vadd.f32 %v278_v22, %v222_v16 }
  0xa7   : > { %v325_v23 = vpop.f32.mrf.mxu2 }
  0xa8   : > { %v332_v25 = vrot.slane %v325_v23, 2 }
  0xaa   : > { %v333_v28 = vsel %vm330_vm2, %v331_v24, %v332_v25 }
  0xab   : > { %v335_v29 = vadd.f32 %v333_v28, %v280_v26 }
  0xad   : > { %v340_v30 = vadd.f32 %v501_v27, %v335_v29 }
  0xaf   : > { %v341_v31 = vmax.f32 %v340_v30, 0.0 }
  0xb1   : > { %v342_v32 = vpack.c.bf16 %v341_v31, %v341_v31 }
  0xb3   : > { %344 = vst.msk [vmem:[%s168_s22] sm:$0xf] %vm343_vm3, %v342_v32 }
  0xb4 PF: > { %s13_s12 = sadd.s32 1, %s508_s12  }
  0xb5   : > { %p10_p4 = scmp.ge.s32.totalorder %s13_s12, 4  }
  0xb7   :  { %12 = sbr.rel (!%p10_p4) target bundleno = 1 (0x1), region = 64 }

// kernel: _lambda_.9
= control target key start
LH: loop header
LB: loop body
LE: loop exit
PB: predicated region body
PF: predicated region fallthrough
CT: control target
= control target key end

     0   :  { %s743_s12 = smov 0   ;;  %s843_s0 = inlined_call_operand.vmem [shape: bf16[2,18,128], index: 0, kind: input, shape index: {}]   ;;  %s844_s1 = inlined_call_operand.vmem [shape: bf16[3,128,128], index: 1, kind: input, shape index: {}]   ;;  %s845_s2 = inlined_call_operand.vmem [shape: f32[1,128], index: 2, kind: input, shape index: {}]   ;;  %s846_s3 = inlined_call_operand.vmem [shape: bf16[2,16,128], index: 3, kind: output, shape index: {}]  }
   0x1 LB: > { %s524_s13 = sadd.s32 4294967295, %s721_s12   ;;  %p528_p0 = scmp.ge.s32.totalorder %s721_s12, 1  ;;  %s721_s12 = sphi %s743_s12, %s13_s12  }
   0x2   : > { %p137_p1 = scmp.lt.s32.totalorder %s721_s12, 3 }
   0x4   : > { %p138_p2 = pnand %p528_p0, %p137_p1 }
   0x5   : > { %p161_p3 = scmp.lt.s32.totalorder (!%p138_p2), %s524_s13, 1 }
   0x6   : > { %141 = sbr.rel (%p138_p2) target bundleno = 204 (0xcc), region = 32 }
   0xb   : > { %v683_v0 = vld [vmem:[%s844_s1 + $0x78] sm:$0xff]  ;;  %v682_v3 = vld [vmem:[%s844_s1 + $0x70] sm:$0xff]  ;;  %v681_v6 = vld [vmem:[%s844_s1 + $0x68] sm:$0xff]  ;;  %s848_s13 = smov (!%p161_p3, %s524_s13), 1  ;;  %vm351_vm0 = vcmask 1046528   ;;  %vm447_vm1 = vcmask 1045504  }
   0xc   : > { %v691_v1 = vld [vmem:[%s844_s1 + $0xb8] sm:$0xff]  ;;  %330 = vmatpush.bf16.msra.mxu1 %v683_v0  ;;  %v690_v4 = vld [vmem:[%s844_s1 + $0xb0] sm:$0xff]  ;;  %v689_v7 = vld [vmem:[%s844_s1 + $0xa8] sm:$0xff]  ;;  %s705_s23 = smul.u32 12, %s848_s13  ;;  %s666_s18 = sshll.u32 %s848_s13, 3 }
   0xd   : > { %v675_v2 = vld [vmem:[%s844_s1 + $0x38] sm:$0xff]  ;;  %426 = vmatpush.bf16.msra.mxu2 %v691_v1  ;;  %v674_v5 = vld [vmem:[%s844_s1 + $0x30] sm:$0xff]  ;;  %v673_v8 = vld [vmem:[%s844_s1 + $0x28] sm:$0xff]  ;;  %s170_s21 = scalar_lea.vmem %s846_s3, %s666_s18 }
   0xe   : > { %248 = vmatpush.bf16.msra.mxu0 %v675_v2  ;;  %697 = vmatpush.bf16.msra.mxu3 %v675_v2  ;;  %v680_v9 = vld [vmem:[%s844_s1 + $0x60] sm:$0xff]  ;;  %v679_v12 = vld [vmem:[%s844_s1 + $0x58] sm:$0xff]  ;;  %v678_v15 = vld [vmem:[%s844_s1 + $0x50] sm:$0xff]  ;;  %s165_s5 = scalar_lea.vmem %s843_s0, %s705_s23 }
   0xf   : > { %v688_v10 = vld [vmem:[%s844_s1 + $0xa0] sm:$0xff]  ;;  %v687_v13 = vld [vmem:[%s844_s1 + $0x98] sm:$0xff]  ;;  %v686_v16 = vld [vmem:[%s844_s1 + $0x90] sm:$0xff] }
  0x10   : > { %331 = vmatpush.bf16.msra.mxu1 %v682_v3  ;;  %v672_v11 = vld [vmem:[%s844_s1 + $0x20] sm:$0xff]  ;;  %v671_v14 = vld [vmem:[%s844_s1 + $0x18] sm:$0xff]  ;;  %v670_v17 = vld [vmem:[%s844_s1 + $0x10] sm:$0xff] }
  0x11   : > { %427 = vmatpush.bf16.msra.mxu2 %v690_v4  ;;  %v677_v18 = vld [vmem:[%s844_s1 + $0x48] sm:$0xff]  ;;  %v676_v22 = vld [vmem:[%s844_s1 + $0x40] sm:$0xff] }
  0x12   : > { %249 = vmatpush.bf16.msra.mxu0 %v674_v5  ;;  %698 = vmatpush.bf16.msra.mxu3 %v674_v5  ;;  %v685_v19 = vld [vmem:[%s844_s1 + $0x88] sm:$0xff]  ;;  %v684_v23 = vld [vmem:[%s844_s1 + $0x80] sm:$0xff] }
  0x13   : > { %v669_v20 = vld [vmem:[%s844_s1 + $0x8] sm:$0xff]  ;;  %v668_v25 = vld [vmem:[%s844_s1] sm:$0xff] }
  0x14   : > { %332 = vmatpush.bf16.msra.mxu1 %v681_v6  ;;  %v173_v21 = vld [vmem:[%s165_s5 + $0x8] sm:$0x1]  ;;  %v667_v26 = vld [vmem:[%s165_s5] sm:$0xff] }
  0x15   : > { %428 = vmatpush.bf16.msra.mxu2 %v689_v7  ;;  %v195_v24 = vunpack.c.l.b16 %v173_v21  ;;  %v714_v46 = vld [vmem:[%s845_s2] ss:$0 sm:$0xff] }
  0x16   : > { %250 = vmatpush.bf16.msra.mxu0 %v673_v8  ;;  %699 = vmatpush.bf16.msra.mxu3 %v673_v8 }
  0x17   : > { %v197_v27 = vpack.c.b16 %v195_v24, %v195_v24 }
  0x18   : > { %333 = vmatpush.bf16.msra.mxu1 %v680_v9 }
  0x19   : > { %429 = vmatpush.bf16.msra.mxu2 %v688_v10 }
  0x1a   : > { %251 = vmatpush.bf16.msra.mxu0 %v672_v11  ;;  %700 = vmatpush.bf16.msra.mxu3 %v672_v11 }
  0x1c   : > { %334 = vmatpush.bf16.msra.mxu1 %v679_v12 }
  0x1d   : > { %430 = vmatpush.bf16.msra.mxu2 %v687_v13 }
  0x1e   : > { %252 = vmatpush.bf16.msra.mxu0 %v671_v14  ;;  %701 = vmatpush.bf16.msra.mxu3 %v671_v14 }
  0x20   : > { %335 = vmatpush.bf16.msra.mxu1 %v678_v15 }
  0x21   : > { %431 = vmatpush.bf16.msra.mxu2 %v686_v16 }
  0x22   : > { %253 = vmatpush.bf16.msra.mxu0 %v670_v17  ;;  %702 = vmatpush.bf16.msra.mxu3 %v670_v17 }
  0x24   : > { %336 = vmatpush.bf16.msra.mxu1 %v677_v18 }
  0x25   : > { %432 = vmatpush.bf16.msra.mxu2 %v685_v19 }
  0x26   : > { %254 = vmatpush.bf16.msra.mxu0 %v669_v20  ;;  %703 = vmatpush.bf16.msra.mxu3 %v669_v20 }
  0x28   : > { %337 = vmatpush.bf16.msra.mxu1 %v676_v22 }
  0x29   : > { %433 = vmatpush.bf16.msra.mxu2 %v684_v23 }
  0x2a   : > { %255 = vmatpush.bf16.msra.mxu0 %v668_v25  ;;  %704 = vmatpush.bf16.msra.mxu3 %v668_v25 }
  0x2b   : > { %338 = vmatmul.bf16.vlgmr.msra.gmra.mxu1 %v667_v26 }
  0x2c   : > { %434 = vmatmul.bf16.vlgmr.msra.gmra.mxu2 %v667_v26 }
  0x2d   : > { %256 = vmatmul.bf16.vlgmr.msra.gmra.mxu0 %v667_v26  ;;  %261 = vmatmul.bf16.vlgmr.msra.gmra.mxu3 %v197_v27 }
  0x3b   : > { %343 = vmatmul.bf16.gmra.mxu1 %v197_v27 }
  0x3c   : > { %439 = vmatmul.bf16.gmra.mxu2 %v197_v27 }
  0xa8   : > { %v339_v28 = vpop.f32.mrf.mxu1 }
  0xa9   : > { %v352_v35 = vrot.slane %v339_v28, 1 }
  0xaa   : > { %v257_v32 = vpop.f32.mrf.mxu0 }
  0xaf   : > { %v435_v29 = vpop.f32.mrf.mxu2 }
  0xb0   : > { %v262_v30 = vpop.f32.mrf.mxu3  ;;  %v341_v31 = vpop.f32.mrf.mxu1  ;;  %v448_v39 = vrot.slane %v435_v29, 2 }
  0xb1   : > { %v353_v33 = vrot.slane %v341_v31, 1 }
  0xb2   : > { %v259_v48 = vpop.f32.mrf.mxu0 }
  0xb3   : > { %v354_v40 = vsel %vm351_vm0, %v352_v35, %v353_v33 }
  0xb4   : > { %v359_v43 = vadd.f32 %v354_v40, %v257_v32 }
  0xb7   : > { %v437_v34 = vpop.f32.mrf.mxu2 }
  0xb8   : > { %v449_v36 = vrot.slane %v437_v34, 2  ;;  %v263_v37 = vpop.f32.mrf.mxu3  ;;  %v344_v38 = vpop.f32.mrf.mxu1 }
  0xb9   : > { %v355_v41 = vrot.slane %v344_v38, 1 }
  0xba   : > { %v450_v42 = vsel %vm447_vm1, %v448_v39, %v449_v36 }
  0xbb   : > { %v356_v44 = vsel %vm351_vm0, %v353_v33, %v355_v41  ;;  %v455_v45 = vadd.f32 %v450_v42, %v359_v43 }
  0xbc   : > { %v360_v50 = vadd.f32 %v356_v44, %v259_v48 }
  0xbd   : > { %v461_v53 = vadd.f32 %v714_v46, %v455_v45 }
  0xbf   : > { %v440_v47 = vpop.f32.mrf.mxu2  ;;  %v463_v56 = vmax.f32 %v461_v53, 0.0 }
  0xc0   : > { %v451_v49 = vrot.slane %v440_v47, 2  ;;  %v346_v51 = vpop.f32.mrf.mxu1 }
  0xc2   : > { %v452_v52 = vsel %vm447_vm1, %v449_v36, %v451_v49 }
  0xc3   : > { %v456_v54 = vadd.f32 %v452_v52, %v360_v50 }
  0xc5   : > { %v462_v55 = vadd.f32 %v714_v46, %v456_v54 }
  0xc7   : > { %v464_v57 = vmax.f32 %v462_v55, 0.0  ;;  %v442_v58 = vpop.f32.mrf.mxu2 }
  0xc9   : > { %v695_v59 = vpack.c.bf16 %v464_v57, %v463_v56 }
  0xcb   : > { %696 = vst [vmem:[%s170_s21] sm:$0xff] %v695_v59  }
  0xcc PF: > { %s13_s12 = sadd.s32 1, %s721_s12  }
  0xcd   : > { %p10_p4 = scmp.ge.s32.totalorder %s13_s12, 4  }
  0xcf   :  { %12 = sbr.rel (!%p10_p4) target bundleno = 1 (0x1), region = 64 }

// kernel: _lambda_.14
= control target key start
LH: loop header
LB: loop body
LE: loop exit
PB: predicated region body
PF: predicated region fallthrough
CT: control target
= control target key end

     0   :  { %s318_s12 = smov 0   ;;  %s338_s0 = inlined_call_operand.vmem [shape: bf16[2,4,32], index: 0, kind: input, shape index: {}]   ;;  %s339_s1 = inlined_call_operand.vmem [shape: bf16[32,128], index: 1, kind: input, shape index: {}]   ;;  %s340_s2 = inlined_call_operand.vmem [shape: f32[1,128], index: 2, kind: input, shape index: {}]   ;;  %s341_s3 = inlined_call_operand.vmem [shape: bf16[2,4,128], index: 3, kind: output, shape index: {}]  }
   0x1 LB: > { %s261_s13 = sadd.s32 4294967295, %s296_s12   ;;  %p265_p0 = scmp.ge.s32.totalorder %s296_s12, 1  ;;  %s296_s12 = sphi %s318_s12, %s13_s12  }
   0x2   : > { %p136_p1 = scmp.lt.s32.totalorder %s296_s12, 3 }
   0x4   : > { %p137_p2 = pnand %p265_p0, %p136_p1 }
   0x5   : > { %p158_p3 = scmp.lt.s32.totalorder (!%p137_p2), %s261_s13, 1 }
   0x6   : > { %140 = sbr.rel (%p137_p2) target bundleno = 153 (0x99), region = 32 }
   0xb   : > { %v280_v0 = vld [vmem:[%s339_s1 + $0x8] sm:$0xff]  ;;  %v279_v1 = vld [vmem:[%s339_s1] sm:$0xff]  ;;  %s343_s13 = smov (!%p158_p3, %s261_s13), 1  ;;  %vm188_vm0 = vcmask 261120  }
   0xc   : > { %198 = vmatpush.bf16.msra.mxu0 %v280_v0  ;;  %s266_s18 = sshll.u32 %s343_s13, 1  ;;  %v289_v3 = vld [vmem:[%s340_s2] ss:$0 sm:$0xff] }
   0xd   : > { %s161_s21 = scalar_lea.vmem %s338_s0, %s266_s18  ;;  %s165_s26 = scalar_lea.vmem %s341_s3, %s266_s18 }
   0xe   : > { %v167_v2 = vld [vmem:[%s161_s21] sm:$0x3] }
  0x10   : > { %199 = vmatpush.bf16.msra.mxu0 %v279_v1 }
  0x13   : > { %276 = vmatmul.msk.bf16.vlgmr.msra.gmra.mxu0 %vm188_vm0, %v167_v2 }
  0x90   : > { %v201_v4 = vpop.f32.mrf.mxu0 }
  0x91   : > { %v202_v5 = vadd.f32 %v289_v3, %v201_v4 }
  0x93   : > { %v205_v6 = vmax.f32 %v202_v5, 0.0 }
  0x95   : > { %v206_v7 = vpack.c.bf16 %v205_v6, %v205_v6 }
  0x97   : > { %207 = vst [vmem:[%s165_s26] sm:$0x3] %v206_v7 }
  0x98   : > { %v203_v8 = vpop.f32.mrf.mxu0 }
  0x99 PF: > { %s13_s12 = sadd.s32 1, %s296_s12  }
  0x9a   : > { %p10_p4 = scmp.ge.s32.totalorder %s13_s12, 4  }
  0x9c   :  { %12 = sbr.rel (!%p10_p4) target bundleno = 1 (0x1), region = 62 }

// kernel: _lambda_.13
= control target key start
LH: loop header
LB: loop body
LE: loop exit
PB: predicated region body
PF: predicated region fallthrough
CT: control target
= control target key end

     0   :  { %8 = vsyncpa [#allocation3], 0  ;;  %s491_s12 = smov 0   ;;  %s518_s0 = inlined_call_operand.vmem [shape: bf16[2,6,32], index: 0, kind: input, shape index: {}]   ;;  %s519_s1 = inlined_call_operand.hbm [shape: bf16[3,32,32], index: 1, kind: input, shape index: {}]   ;;  %s520_s2 = inlined_call_operand.vmem [shape: f32[1,32], index: 2, kind: input, shape index: {}]   ;;  %s521_s3 = inlined_call_operand.vmem [shape: bf16[2,4,32], index: 3, kind: output, shape index: {}]  }
   0x1 LB: > { %s124_s15 = sshll.u32 %s519_s1, 4  ;;  %s360_s16 = sadd.s32 4294967295, %s466_s12   ;;  %s466_s12 = sphi %s491_s12, %s14_s12   ;;  %s125_s15 = int_to_ptr.hbm [resolvable:$true] %s124_s15 }
   0x2   : > { %p362_p0 = scmp.ge.s32.totalorder %s466_s12, 1  ;;  %p113_p1 = scmp.lt.s32.totalorder %s466_s12, 3 }
   0x3   : > { %p412_p2 = scmp.eq.s32.totalorder %s360_s16, 0  ;;  %s468_s17 = smov [#allocation2]  }
   0x4   : > { %p114_p3 = pnand %p362_p0, %p113_p1  ;;  %s126_s18 = sshll.u32 %s468_s17, 4  ;;  %s127_s18 = int_to_ptr.vmem [resolvable:$true] %s126_s18 }
   0x5   : > { %s469_s19 = smov 64   ;;  %s470_s20 = smov 4  }
   0x6   : > { %p408_p4 = pneg %p114_p3  ;;  %152 = sbr.rel (%p114_p3) target bundleno = 164 (0xa4), region = 32 }
   0x8   : > { %p409_p5 = pnand %p412_p2, %p408_p4 }
   0xa   : > { %411 = dma.hbm_to_vmem [thread:$0]  (!%p409_p5), %s125_s15, 768, %s127_s18, [#allocation3], %s469_s19, %s469_s19, %s470_s20  }
   0xb   : > { %461 = dma.done.wait (%p412_p2), [#allocation3], 768  }
   0xc   : > { %463 = vsyncadd (%p412_p2), [#allocation3], 4294966528  ;;  %p175_p6 = scmp.lt.s32.totalorder %s360_s16, 1  ;;  %v399_v0 = vld [vmem:[#allocation2 + $0x8] sm:$0xff]  ;;  %v401_v1 = vld [vmem:[#allocation2 + $0x18] sm:$0xff]  ;;  %vm201_vm0 = vcmask 261120  }
   0xd   : > { %v403_v2 = vld [vmem:[#allocation2 + $0x28] sm:$0xff]  ;;  %211 = vmatpush.bf16.msra.mxu0 %v399_v0  ;;  %241 = vmatpush.bf16.msra.mxu1 %v401_v1  ;;  %v398_v3 = vld [vmem:[#allocation2] sm:$0xff]  ;;  %v400_v4 = vld [vmem:[#allocation2 + $0x10] sm:$0xff]  ;;  %vm293_vm1 = vcmask 254976  }
   0xe   : > { %s523_s16 = smov (!%p175_p6, %s360_s16), 1  ;;  %275 = vmatpush.bf16.msra.mxu2 %v403_v2  ;;  %v402_v5 = vld [vmem:[#allocation2 + $0x20] sm:$0xff] }
   0xf   : > { %s367_s21 = sshll.u32 %s523_s16, 2  ;;  %v425_v13 = vld [vmem:[%s520_s2] ss:$0 sm:$0xff]  ;;  %s368_s27 = sshll.u32 %s523_s16, 1 }
  0x10   : > { %s178_s24 = scalar_lea.vmem %s518_s0, %s367_s21  ;;  %s182_s30 = scalar_lea.vmem %s521_s3, %s368_s27 }
  0x11   : > { %212 = vmatpush.bf16.msra.mxu0 %v398_v3  ;;  %242 = vmatpush.bf16.msra.mxu1 %v400_v4  ;;  %v184_v6 = vld [vmem:[%s178_s24] sm:$0x7] }
  0x12   : > { %276 = vmatpush.bf16.msra.mxu2 %v402_v5 }
  0x14   : > { %377 = vmatmul.msk.bf16.vlgmr.msra.gmra.mxu0 %vm201_vm0, %v184_v6  ;;  %386 = vmatmul.msk.bf16.vlgmr.msra.gmra.mxu1 %vm201_vm0, %v184_v6 }
  0x15   : > { %395 = vmatmul.msk.bf16.vlgmr.msra.gmra.mxu2 %vm201_vm0, %v184_v6 }
  0x91   : > { %v214_v7 = vpop.f32.mrf.mxu0  ;;  %v244_v8 = vpop.f32.mrf.mxu1 }
  0x92   : > { %v249_v9 = vrot.slane %v244_v8, 1 }
  0x94   : > { %v251_v10 = vadd.f32 %v249_v9, %v214_v7 }
  0x98   : > { %v278_v11 = vpop.f32.mrf.mxu2 }
  0x99   : > { %v283_v12 = vrot.slane %v278_v11, 2  ;;  %v216_v14 = vpop.f32.mrf.mxu0  ;;  %v246_v15 = vpop.f32.mrf.mxu1 }
  0x9b   : > { %v285_v16 = vadd.f32 %v283_v12, %v251_v10 }
  0x9d   : > { %v290_v17 = vadd.f32 %v425_v13, %v285_v16 }
  0x9f   : > { %v291_v18 = vmax.f32 %v290_v17, 0.0 }
  0xa0   : > { %v280_v19 = vpop.f32.mrf.mxu2 }
  0xa1   : > { %v292_v20 = vpack.c.bf16 %v291_v18, %v291_v18 }
  0xa3   : > { %294 = vst.msk [vmem:[%s182_s30] sm:$0x3] %vm293_vm1, %v292_v20 }
  0xa4 PF: > { %s14_s12 = sadd.s32 1, %s466_s12  }
  0xa5   : > { %p11_p7 = scmp.ge.s32.totalorder %s14_s12, 4  }
  0xa7   :  { %13 = sbr.rel (!%p11_p7) target bundleno = 1 (0x1), region = 69 }
  0xac   :  { %314 = vsyncpa [#allocation3], 1 }
  0xad   :  { %316 = vsyncpa [#allocation3 + $0x1], 1 }

// kernel: _lambda_.16
= control target key start
LH: loop header
LB: loop body
LE: loop exit
PB: predicated region body
PF: predicated region fallthrough
CT: control target
= control target key end

     0   :  { %8 = vsyncpa [#allocation3], 0  ;;  %s483_s12 = smov 0   ;;  %s517_s0 = inlined_call_operand.vmem [shape: bf16[2,8,64], index: 0, kind: input, shape index: {}]   ;;  %s518_s1 = inlined_call_operand.hbm [shape: bf16[64,256], index: 1, kind: input, shape index: {}]   ;;  %s519_s2 = inlined_call_operand.vmem [shape: f32[1,256], index: 2, kind: input, shape index: {}]   ;;  %s520_s3 = inlined_call_operand.vmem [shape: bf16[2,8,256], index: 3, kind: output, shape index: {}]  }
   0x1 LB: > { %s124_s15 = sshll.u32 %s518_s1, 4  ;;  %s492_s16 = sadd.s32 4294967295, %s458_s12   ;;  %s458_s12 = sphi %s483_s12, %s14_s12   ;;  %s125_s15 = int_to_ptr.hbm [resolvable:$true] %s124_s15 }
   0x2   : > { %p344_p0 = scmp.ge.s32.totalorder %s458_s12, 1  ;;  %p113_p1 = scmp.lt.s32.totalorder %s458_s12, 3 }
   0x3   : > { %p405_p2 = scmp.eq.s32.totalorder %s492_s16, 0  ;;  %s460_s17 = smov [#allocation2]  }
   0x4   : > { %p114_p3 = pnand %p344_p0, %p113_p1  ;;  %s126_s18 = sshll.u32 %s460_s17, 4  ;;  %s127_s18 = int_to_ptr.vmem [resolvable:$true] %s126_s18 }
   0x5   : > { %s461_s19 = smov 128   ;;  %s462_s20 = smov 8  }
   0x6   : > { %p401_p4 = pneg %p114_p3  ;;  %152 = sbr.rel (%p114_p3) target bundleno = 165 (0xa5), region = 32 }
   0x8   : > { %p402_p5 = pnand %p405_p2, %p401_p4 }
   0xa   : > { %404 = dma.hbm_to_vmem [thread:$0]  (!%p402_p5), %s125_s15, 1024, %s127_s18, [#allocation3], %s461_s19, %s461_s19, %s462_s20  }
   0xb   : > { %453 = dma.done.wait (%p405_p2), [#allocation3], 1024  }
   0xc   : > { %455 = vsyncadd (%p405_p2), [#allocation3], 4294966272  ;;  %p176_p6 = scmp.lt.s32.totalorder %s492_s16, 1  ;;  %v378_v0 = vld [vmem:[#allocation2 + $0x30] sm:$0xf]  ;;  %vm241_vm0 = vcmask 523264  }
   0xd   : > { %v396_v1 = vld [vmem:[#allocation2 + $0x34] sm:$0xf0]  ;;  %v395_v2 = vld [vmem:[#allocation2 + $0x34] sm:$0xf]  ;;  %v380_v4 = vld [vmem:[#allocation2 + $0x38] sm:$0xf0] }
   0xe   : > { %v379_v3 = vor.u32 %v396_v1, %v378_v0  ;;  %v370_v5 = vld [vmem:[#allocation2 + $0x20] sm:$0xf]  ;;  %v394_v6 = vld [vmem:[#allocation2 + $0x24] sm:$0xf0]  ;;  %v383_v7 = vor.u32 %v395_v2, %v380_v4  ;;  %v393_v8 = vld [vmem:[#allocation2 + $0x24] sm:$0xf] }
   0xf   : > { %v372_v9 = vld [vmem:[#allocation2 + $0x28] sm:$0xf0]  ;;  %v371_v10 = vor.u32 %v394_v6, %v370_v5  ;;  %v362_v12 = vld [vmem:[#allocation2 + $0x10] sm:$0xf]  ;;  %v392_v13 = vld [vmem:[#allocation2 + $0x14] sm:$0xf0] }
  0x10   : > { %249 = vmatpush.bf16.msra.mxu0 %v379_v3  ;;  %262 = vmatpush.bf16.msra.mxu1 %v383_v7  ;;  %v375_v11 = vor.u32 %v393_v8, %v372_v9  ;;  %v391_v14 = vld [vmem:[#allocation2 + $0x14] sm:$0xf]  ;;  %v364_v15 = vld [vmem:[#allocation2 + $0x18] sm:$0xf0]  ;;  %s522_s16 = smov (!%p176_p6, %s492_s16), 1  ;;  %v363_v16 = vor.u32 %v392_v13, %v362_v12 }
  0x11   : > { %v367_v17 = vor.u32 %v391_v14, %v364_v15  ;;  %v354_v18 = vld [vmem:[#allocation2] sm:$0xf]  ;;  %v390_v19 = vld [vmem:[#allocation2 + $0x4] sm:$0xf0]  ;;  %v389_v20 = vld [vmem:[#allocation2 + $0x4] sm:$0xf] }
  0x12   : > { %v356_v21 = vld [vmem:[#allocation2 + $0x8] sm:$0xf0]  ;;  %s349_s21 = sshll.u32 %s522_s16, 2  ;;  %v355_v22 = vor.u32 %v390_v19, %v354_v18  ;;  %v195_v25 = vld [vmem:[%s519_s2] sm:$0x3]  ;;  %s388_s27 = sshll.u32 %s522_s16, 3 }
  0x13   : > { %v359_v23 = vor.u32 %v389_v20, %v356_v21  ;;  %s179_s24 = scalar_lea.vmem %s517_s0, %s349_s21  ;;  %v197_v26 = vperm.slane %v195_v25, 0  ;;  %v198_v27 = vperm.slane %v195_v25, 1  ;;  %s184_s30 = scalar_lea.vmem %s520_s3, %s388_s27 }
  0x14   : > { %250 = vmatpush.bf16.msra.mxu0 %v371_v10  ;;  %263 = vmatpush.bf16.msra.mxu1 %v375_v11  ;;  %v186_v24 = vld [vmem:[%s179_s24] sm:$0xf] }
  0x18   : > { %251 = vmatpush.bf16.msra.mxu0 %v363_v16  ;;  %264 = vmatpush.bf16.msra.mxu1 %v367_v17 }
  0x1c   : > { %252 = vmatpush.bf16.msra.mxu0 %v355_v22  ;;  %265 = vmatpush.bf16.msra.mxu1 %v359_v23 }
  0x1f   : > { %384 = vmatmul.msk.bf16.vlgmr.msra.gmra.mxu0 %vm241_vm0, %v186_v24  ;;  %385 = vmatmul.msk.bf16.vlgmr.msra.gmra.mxu1 %vm241_vm0, %v186_v24 }
  0x9c   : > { %v254_v28 = vpop.f32.mrf.mxu0  ;;  %v267_v30 = vpop.f32.mrf.mxu1 }
  0x9d   : > { %v255_v29 = vadd.f32 %v254_v28, %v197_v26  ;;  %v268_v31 = vadd.f32 %v267_v30, %v198_v27 }
  0x9f   : > { %v271_v32 = vmax.f32 %v255_v29, 0.0  ;;  %v272_v33 = vmax.f32 %v268_v31, 0.0 }
  0xa1   : > { %v273_v34 = vpack.c.bf16 %v272_v33, %v271_v32 }
  0xa3   : > { %274 = vst [vmem:[%s184_s30] sm:$0xff] %v273_v34 }
  0xa4   : > { %v256_v35 = vpop.f32.mrf.mxu0  ;;  %v269_v36 = vpop.f32.mrf.mxu1 }
  0xa5 PF: > { %s14_s12 = sadd.s32 1, %s458_s12  }
  0xa6   : > { %p11_p7 = scmp.ge.s32.totalorder %s14_s12, 4  }
  0xa8   :  { %13 = sbr.rel (!%p11_p7) target bundleno = 1 (0x1), region = 67 }
  0xad   :  { %296 = vsyncpa [#allocation3], 1 }
  0xae   :  { %298 = vsyncpa [#allocation3 + $0x1], 1 }

// kernel: _lambda_.15
= control target key start
LH: loop header
LB: loop body
LE: loop exit
PB: predicated region body
PF: predicated region fallthrough
CT: control target
= control target key end

     0   :  { %s877_s18 = smov 0   ;;  %s986_s0 = inlined_call_operand.vmem [shape: bf16[2,10,64], index: 0, kind: input, shape index: {}]   ;;  %s987_s1 = inlined_call_operand.vmem [shape: bf16[2,10,64], index: 1, kind: input, shape index: {}]   ;;  %s988_s2 = inlined_call_operand.vmem [shape: bf16[3,64,64], index: 2, kind: input, shape index: {}]   ;;  %s989_s3 = inlined_call_operand.vmem [shape: bf16[3,64,64], index: 3, kind: input, shape index: {}]   ;;  %s990_s4 = inlined_call_operand.vmem [shape: f32[1,64], index: 4, kind: input, shape index: {}]   ;;  %s991_s5 = inlined_call_operand.vmem [shape: bf16[2,8,64], index: 5, kind: output, shape index: {}]  }
   0x1 LB: > { %s648_s19 = sadd.s32 4294967295, %s845_s18   ;;  %p652_p0 = scmp.ge.s32.totalorder %s845_s18, 1  ;;  %s845_s18 = sphi %s877_s18, %s15_s18  }
   0x2   : > { %p197_p1 = scmp.lt.s32.totalorder %s845_s18, 3 }
   0x4   : > { %p198_p2 = pnand %p652_p0, %p197_p1 }
   0x5   : > { %p229_p3 = scmp.lt.s32.totalorder (!%p198_p2), %s648_s19, 1 }
   0x6   : > { %201 = sbr.rel (%p198_p2) target bundleno = 191 (0xbf), region = 40 }
   0xb   : > { %v808_v0 = vld [vmem:[%s988_s2 + $0x18] sm:$0xff]  ;;  %v807_v3 = vld [vmem:[%s988_s2 + $0x10] sm:$0xff]  ;;  %s993_s19 = smov (!%p229_p3, %s648_s19), 1  ;;  %v806_v8 = vld [vmem:[%s988_s2 + $0x8] sm:$0xff]  ;;  %vm283_vm0 = vcmask 523264   ;;  %vm349_vm1 = vcmask 1046528  }
   0xc   : > { %v812_v1 = vld [vmem:[%s988_s2 + $0x38] sm:$0xff]  ;;  %291 = vmatpush.bf16.msra.mxu0 %v808_v0  ;;  %v811_v4 = vld [vmem:[%s988_s2 + $0x30] sm:$0xff]  ;;  %s802_s9 = sshll.u32 %s993_s19, 3  ;;  %v810_v9 = vld [vmem:[%s988_s2 + $0x28] sm:$0xff]  ;;  %vm404_vm2 = vcmask 1045504   ;;  %s657_s6 = sshll.u32 %s993_s19, 2 }
   0xd   : > { %v816_v2 = vld [vmem:[%s988_s2 + $0x58] sm:$0xff]  ;;  %337 = vmatpush.bf16.msra.mxu1 %v812_v1  ;;  %v815_v5 = vld [vmem:[%s988_s2 + $0x50] sm:$0xff]  ;;  %v814_v10 = vld [vmem:[%s988_s2 + $0x48] sm:$0xff]  ;;  %s233_s22 = scalar_lea.vmem %s986_s0, %s802_s9  ;;  %s238_s11 = scalar_lea.vmem %s987_s1, %s802_s9  ;;  %vm581_vm3 = vcmask 519168  }
   0xe   : > { %392 = vmatpush.bf16.msra.mxu2 %v816_v2  ;;  %v821_v6 = vld [vmem:[%s989_s3 + $0x18] sm:$0xff]  ;;  %v820_v7 = vld [vmem:[%s989_s3 + $0x10] sm:$0xff]  ;;  %v805_v11 = vld [vmem:[%s988_s2] sm:$0xff]  ;;  %s242_s10 = scalar_lea.vmem %s991_s5, %s657_s6 }
   0xf   : > { %456 = vmatpush.bf16.msra.mxu3 %v821_v6  ;;  %v819_v12 = vld [vmem:[%s989_s3 + $0x8] sm:$0xff]  ;;  %v809_v13 = vld [vmem:[%s988_s2 + $0x20] sm:$0xff]  ;;  %v825_v17 = vld [vmem:[%s989_s3 + $0x38] sm:$0xff] }
  0x10   : > { %292 = vmatpush.bf16.msra.mxu0 %v807_v3  ;;  %v660_v14 = vld [vmem:[%s233_s22] sm:$0xf]  ;;  %v804_v15 = vld [vmem:[%s233_s22] sm:$0x10]  ;;  %v829_v18 = vld [vmem:[%s989_s3 + $0x58] sm:$0xff] }
  0x11   : > { %338 = vmatpush.bf16.msra.mxu1 %v811_v4  ;;  %v813_v16 = vld [vmem:[%s988_s2 + $0x40] sm:$0xff]  ;;  %v661_v19 = vor.u32 %v804_v15, %v660_v14  ;;  %v824_v23 = vld [vmem:[%s989_s3 + $0x30] sm:$0xff]  ;;  %v823_v26 = vld [vmem:[%s989_s3 + $0x28] sm:$0xff] }
  0x12   : > { %393 = vmatpush.bf16.msra.mxu2 %v815_v5  ;;  %v818_v20 = vld [vmem:[%s989_s3] sm:$0xff]  ;;  %v828_v24 = vld [vmem:[%s989_s3 + $0x50] sm:$0xff]  ;;  %v827_v27 = vld [vmem:[%s989_s3 + $0x48] sm:$0xff] }
  0x13   : > { %457 = vmatpush.bf16.msra.mxu3 %v820_v7  ;;  %v731_v21 = vld [vmem:[%s238_s11] sm:$0xf]  ;;  %v817_v22 = vld [vmem:[%s238_s11] sm:$0x10] }
  0x14   : > { %293 = vmatpush.bf16.msra.mxu0 %v806_v8  ;;  %v732_v25 = vor.u32 %v817_v22, %v731_v21  ;;  %v822_v28 = vld [vmem:[%s989_s3 + $0x20] sm:$0xff] }
  0x15   : > { %339 = vmatpush.bf16.msra.mxu1 %v810_v9  ;;  %v826_v29 = vld [vmem:[%s989_s3 + $0x40] sm:$0xff] }
  0x16   : > { %394 = vmatpush.bf16.msra.mxu2 %v814_v10  ;;  %v838_v57 = vld [vmem:[%s990_s4] ss:$0 sm:$0xff] }
  0x17   : > { %458 = vmatpush.bf16.msra.mxu3 %v819_v12 }
  0x18   : > { %294 = vmatpush.bf16.msra.mxu0 %v805_v11 }
  0x19   : > { %340 = vmatpush.bf16.msra.mxu1 %v809_v13 }
  0x1a   : > { %395 = vmatpush.bf16.msra.mxu2 %v813_v16 }
  0x1b   : > { %678 = vmatmul.msk.bf16.vlgmr.msra.gmra.mxu0 %vm283_vm0, %v661_v19  ;;  %459 = vmatpush.bf16.msra.mxu3 %v818_v20 }
  0x1c   : > { %503 = vmatpush.bf16.msrb.mxu0 %v825_v17  ;;  %703 = vmatmul.msk.bf16.vlgmr.msra.gmra.mxu1 %vm283_vm0, %v661_v19 }
  0x1d   : > { %557 = vmatpush.bf16.msrb.mxu1 %v829_v18  ;;  %728 = vmatmul.msk.bf16.vlgmr.msra.gmra.mxu2 %vm283_vm0, %v661_v19 }
  0x1e   : > { %749 = vmatmul.msk.bf16.vlgmr.msra.gmra.mxu3 %vm283_vm0, %v732_v25 }
  0x20   : > { %504 = vmatpush.bf16.msrb.mxu0 %v824_v23 }
  0x21   : > { %558 = vmatpush.bf16.msrb.mxu1 %v828_v24 }
  0x24   : > { %505 = vmatpush.bf16.msrb.mxu0 %v823_v26 }
  0x25   : > { %559 = vmatpush.bf16.msrb.mxu1 %v827_v27 }
  0x28   : > { %506 = vmatpush.bf16.msrb.mxu0 %v822_v28 }
  0x29   : > { %560 = vmatpush.bf16.msrb.mxu1 %v826_v29 }
  0x2b   : > { %774 = vmatmul.msk.bf16.vlgmr.msrb.gmra.mxu0 %vm283_vm0, %v732_v25 }
  0x2c   : > { %799 = vmatmul.msk.bf16.vlgmr.msrb.gmra.mxu1 %vm283_vm0, %v732_v25 }
  0x98   : > { %v296_v30 = vpop.f32.mrf.mxu0 }
  0x99   : > { %v342_v31 = vpop.f32.mrf.mxu1 }
  0x9a   : > { %v350_v37 = vrot.slane %v342_v31, 1 }
  0xa0   : > { %v397_v32 = vpop.f32.mrf.mxu2  ;;  %v298_v33 = vpop.f32.mrf.mxu0 }
  0xa1   : > { %v344_v34 = vpop.f32.mrf.mxu1  ;;  %v461_v35 = vpop.f32.mrf.mxu3  ;;  %v405_v42 = vrot.slane %v397_v32, 2 }
  0xa2   : > { %v351_v36 = vrot.slane %v344_v34, 1 }
  0xa4   : > { %v352_v43 = vsel %vm349_vm1, %v350_v37, %v351_v36 }
  0xa5   : > { %v354_v46 = vadd.f32 %v352_v43, %v296_v30 }
  0xa8   : > { %v399_v38 = vpop.f32.mrf.mxu2  ;;  %v508_v40 = vpop.f32.mrf.mxu0 }
  0xa9   : > { %v406_v39 = vrot.slane %v399_v38, 2  ;;  %v562_v41 = vpop.f32.mrf.mxu1  ;;  %v463_v44 = vpop.f32.mrf.mxu3  ;;  %v515_v50 = vrot.slane %v508_v40, 1 }
  0xaa   : > { %v569_v54 = vrot.slane %v562_v41, 2 }
  0xab   : > { %v407_v45 = vsel %vm404_vm2, %v405_v42, %v406_v39 }
  0xac   : > { %v409_v47 = vadd.f32 %v407_v45, %v354_v46 }
  0xae   : > { %v465_v53 = vadd.f32 %v461_v35, %v409_v47 }
  0xb0   : > { %v510_v48 = vpop.f32.mrf.mxu0 }
  0xb1   : > { %v564_v49 = vpop.f32.mrf.mxu1  ;;  %v516_v51 = vrot.slane %v510_v48, 1 }
  0xb2   : > { %v570_v52 = vrot.slane %v564_v49, 2 }
  0xb3   : > { %v517_v55 = vsel %vm349_vm1, %v515_v50, %v516_v51 }
  0xb4   : > { %v519_v56 = vadd.f32 %v517_v55, %v465_v53  ;;  %v571_v58 = vsel %vm404_vm2, %v569_v54, %v570_v52 }
  0xb6   : > { %v573_v59 = vadd.f32 %v571_v58, %v519_v56 }
  0xb8   : > { %v578_v60 = vadd.f32 %v838_v57, %v573_v59 }
  0xba   : > { %v579_v61 = vmax.f32 %v578_v60, 0.0 }
  0xbc   : > { %v580_v62 = vpack.c.bf16 %v579_v61, %v579_v61 }
  0xbe   : > { %582 = vst.msk [vmem:[%s242_s10] sm:$0xf] %vm581_vm3, %v580_v62 }
  0xbf PF: > { %s15_s18 = sadd.s32 1, %s845_s18  }
  0xc0   : > { %p12_p4 = scmp.ge.s32.totalorder %s15_s18, 4  }
  0xc2   :  { %14 = sbr.rel (!%p12_p4) target bundleno = 1 (0x1), region = 77 }

// kernel: _lambda_.17
= control target key start
LH: loop header
LB: loop body
LE: loop exit
PB: predicated region body
PF: predicated region fallthrough
CT: control target
= control target key end

     0   :  { %s1291_s18 = smov 0   ;;  %s1479_s0 = inlined_call_operand.vmem [shape: bf16[2,18,128], index: 0, kind: input, shape index: {}]   ;;  %s1480_s1 = inlined_call_operand.vmem [shape: bf16[2,18,128], index: 1, kind: input, shape index: {}]   ;;  %s1481_s2 = inlined_call_operand.vmem [shape: bf16[3,128,128], index: 2, kind: input, shape index: {}]   ;;  %s1482_s3 = inlined_call_operand.vmem [shape: bf16[3,128,128], index: 3, kind: input, shape index: {}]   ;;  %s1483_s4 = inlined_call_operand.vmem [shape: f32[1,128], index: 4, kind: input, shape index: {}]   ;;  %s1484_s5 = inlined_call_operand.vmem [shape: bf16[2,16,128], index: 5, kind: output, shape index: {}]  }
   0x1 LB: > { %s896_s19 = sadd.s32 4294967295, %s1259_s18   ;;  %p900_p0 = scmp.ge.s32.totalorder %s1259_s18, 1  ;;  %s1259_s18 = sphi %s1291_s18, %s15_s18  }
   0x2   : > { %p197_p1 = scmp.lt.s32.totalorder %s1259_s18, 3 }
   0x4   : > { %p198_p2 = pnand %p900_p0, %p197_p1 }
   0x5   : > { %p230_p3 = scmp.lt.s32.totalorder (!%p198_p2), %s896_s19, 1 }
   0x6   : > { %201 = sbr.rel (%p198_p2) target bundleno = 223 (0xdf), region = 40 }
   0xb   : > { %v1180_v0 = vld [vmem:[%s1481_s2 + $0x38] sm:$0xff]  ;;  %v1179_v4 = vld [vmem:[%s1481_s2 + $0x30] sm:$0xff]  ;;  %v1178_v8 = vld [vmem:[%s1481_s2 + $0x28] sm:$0xff]  ;;  %s1486_s19 = smov (!%p230_p3, %s896_s19), 1  ;;  %vm425_vm0 = vcmask 1046528   ;;  %vm521_vm1 = vcmask 1045504  }
   0xc   : > { %v1188_v1 = vld [vmem:[%s1481_s2 + $0x78] sm:$0xff]  ;;  %322 = vmatpush.bf16.msra.mxu0 %v1180_v0  ;;  %v1187_v5 = vld [vmem:[%s1481_s2 + $0x70] sm:$0xff]  ;;  %v1186_v9 = vld [vmem:[%s1481_s2 + $0x68] sm:$0xff]  ;;  %s1243_s26 = smul.u32 12, %s1486_s19  ;;  %s1171_s8 = sshll.u32 %s1486_s19, 3 }
   0xd   : > { %v1196_v2 = vld [vmem:[%s1481_s2 + $0xb8] sm:$0xff]  ;;  %404 = vmatpush.bf16.msra.mxu1 %v1188_v1  ;;  %v1195_v6 = vld [vmem:[%s1481_s2 + $0xb0] sm:$0xff]  ;;  %v1194_v10 = vld [vmem:[%s1481_s2 + $0xa8] sm:$0xff]  ;;  %s244_s11 = scalar_lea.vmem %s1484_s5, %s1171_s8 }
   0xe   : > { %v1205_v3 = vld [vmem:[%s1482_s3 + $0x38] sm:$0xff]  ;;  %500 = vmatpush.bf16.msra.mxu2 %v1196_v2  ;;  %v1204_v7 = vld [vmem:[%s1482_s3 + $0x30] sm:$0xff]  ;;  %v1203_v11 = vld [vmem:[%s1482_s3 + $0x28] sm:$0xff]  ;;  %s234_s12 = scalar_lea.vmem %s1479_s0, %s1243_s26  ;;  %s239_s21 = scalar_lea.vmem %s1480_s1, %s1243_s26 }
   0xf   : > { %608 = vmatpush.bf16.msra.mxu3 %v1205_v3  ;;  %v1177_v12 = vld [vmem:[%s1481_s2 + $0x20] sm:$0xff]  ;;  %v1176_v16 = vld [vmem:[%s1481_s2 + $0x18] sm:$0xff]  ;;  %v1175_v20 = vld [vmem:[%s1481_s2 + $0x10] sm:$0xff] }
  0x10   : > { %323 = vmatpush.bf16.msra.mxu0 %v1179_v4  ;;  %v1185_v13 = vld [vmem:[%s1481_s2 + $0x60] sm:$0xff]  ;;  %v1184_v17 = vld [vmem:[%s1481_s2 + $0x58] sm:$0xff]  ;;  %v1183_v21 = vld [vmem:[%s1481_s2 + $0x50] sm:$0xff] }
  0x11   : > { %405 = vmatpush.bf16.msra.mxu1 %v1187_v5  ;;  %v1193_v14 = vld [vmem:[%s1481_s2 + $0xa0] sm:$0xff]  ;;  %v1192_v18 = vld [vmem:[%s1481_s2 + $0x98] sm:$0xff]  ;;  %v1191_v22 = vld [vmem:[%s1481_s2 + $0x90] sm:$0xff] }
  0x12   : > { %501 = vmatpush.bf16.msra.mxu2 %v1195_v6  ;;  %v1202_v15 = vld [vmem:[%s1482_s3 + $0x20] sm:$0xff]  ;;  %v1201_v19 = vld [vmem:[%s1482_s3 + $0x18] sm:$0xff]  ;;  %v1200_v23 = vld [vmem:[%s1482_s3 + $0x10] sm:$0xff] }
  0x13   : > { %609 = vmatpush.bf16.msra.mxu3 %v1204_v7  ;;  %v1174_v24 = vld [vmem:[%s1481_s2 + $0x8] sm:$0xff]  ;;  %v1173_v28 = vld [vmem:[%s1481_s2] sm:$0xff]  ;;  %v1213_v32 = vld [vmem:[%s1482_s3 + $0x78] sm:$0xff] }
  0x14   : > { %324 = vmatpush.bf16.msra.mxu0 %v1178_v8  ;;  %v1182_v25 = vld [vmem:[%s1481_s2 + $0x48] sm:$0xff]  ;;  %v1181_v29 = vld [vmem:[%s1481_s2 + $0x40] sm:$0xff]  ;;  %v1221_v35 = vld [vmem:[%s1482_s3 + $0xb8] sm:$0xff] }
  0x15   : > { %406 = vmatpush.bf16.msra.mxu1 %v1186_v9  ;;  %v1190_v26 = vld [vmem:[%s1481_s2 + $0x88] sm:$0xff]  ;;  %v1189_v30 = vld [vmem:[%s1481_s2 + $0x80] sm:$0xff]  ;;  %v1212_v36 = vld [vmem:[%s1482_s3 + $0x70] sm:$0xff] }
  0x16   : > { %502 = vmatpush.bf16.msra.mxu2 %v1194_v10  ;;  %v1199_v27 = vld [vmem:[%s1482_s3 + $0x8] sm:$0xff]  ;;  %v1198_v31 = vld [vmem:[%s1482_s3] sm:$0xff]  ;;  %v1220_v37 = vld [vmem:[%s1482_s3 + $0xb0] sm:$0xff] }
  0x17   : > { %610 = vmatpush.bf16.msra.mxu3 %v1203_v11  ;;  %v1172_v33 = vld [vmem:[%s234_s12] sm:$0xff]  ;;  %v1211_v38 = vld [vmem:[%s1482_s3 + $0x68] sm:$0xff]  ;;  %v1209_v46 = vld [vmem:[%s1482_s3 + $0x58] sm:$0xff] }
  0x18   : > { %325 = vmatpush.bf16.msra.mxu0 %v1177_v12  ;;  %v1411_v34 = vld [vmem:[%s239_s21] sm:$0xff]  ;;  %v247_v39 = vld [vmem:[%s234_s12 + $0x8] sm:$0x1]  ;;  %v1217_v49 = vld [vmem:[%s1482_s3 + $0x98] sm:$0xff] }
  0x19   : > { %407 = vmatpush.bf16.msra.mxu1 %v1185_v13  ;;  %v1219_v40 = vld [vmem:[%s1482_s3 + $0xa8] sm:$0xff]  ;;  %v1210_v42 = vld [vmem:[%s1482_s3 + $0x60] sm:$0xff]  ;;  %v269_v43 = vunpack.c.l.b16 %v247_v39  ;;  %v1208_v50 = vld [vmem:[%s1482_s3 + $0x50] sm:$0xff] }
  0x1a   : > { %503 = vmatpush.bf16.msra.mxu2 %v1193_v14  ;;  %v533_v41 = vld [vmem:[%s239_s21 + $0x8] sm:$0x1]  ;;  %v1218_v45 = vld [vmem:[%s1482_s3 + $0xa0] sm:$0xff]  ;;  %v1216_v51 = vld [vmem:[%s1482_s3 + $0x90] sm:$0xff] }
  0x1b   : > { %611 = vmatpush.bf16.msra.mxu3 %v1202_v15  ;;  %v555_v44 = vunpack.c.l.b16 %v533_v41  ;;  %v271_v47 = vpack.c.b16 %v269_v43, %v269_v43  ;;  %v1207_v52 = vld [vmem:[%s1482_s3 + $0x48] sm:$0xff]  ;;  %v1206_v54 = vld [vmem:[%s1482_s3 + $0x40] sm:$0xff] }
  0x1c   : > { %326 = vmatpush.bf16.msra.mxu0 %v1176_v16  ;;  %v1215_v53 = vld [vmem:[%s1482_s3 + $0x88] sm:$0xff]  ;;  %v1214_v55 = vld [vmem:[%s1482_s3 + $0x80] sm:$0xff] }
  0x1d   : > { %408 = vmatpush.bf16.msra.mxu1 %v1184_v17  ;;  %v557_v48 = vpack.c.b16 %v555_v44, %v555_v44 }
  0x1e   : > { %504 = vmatpush.bf16.msra.mxu2 %v1192_v18 }
  0x1f   : > { %612 = vmatpush.bf16.msra.mxu3 %v1201_v19 }
  0x20   : > { %327 = vmatpush.bf16.msra.mxu0 %v1175_v20 }
  0x21   : > { %409 = vmatpush.bf16.msra.mxu1 %v1183_v21 }
  0x22   : > { %505 = vmatpush.bf16.msra.mxu2 %v1191_v22 }
  0x23   : > { %613 = vmatpush.bf16.msra.mxu3 %v1200_v23 }
  0x24   : > { %328 = vmatpush.bf16.msra.mxu0 %v1174_v24 }
  0x25   : > { %410 = vmatpush.bf16.msra.mxu1 %v1182_v25 }
  0x26   : > { %506 = vmatpush.bf16.msra.mxu2 %v1190_v26 }
  0x27   : > { %614 = vmatpush.bf16.msra.mxu3 %v1199_v27 }
  0x28   : > { %329 = vmatpush.bf16.msra.mxu0 %v1173_v28 }
  0x29   : > { %411 = vmatpush.bf16.msra.mxu1 %v1181_v29 }
  0x2a   : > { %507 = vmatpush.bf16.msra.mxu2 %v1189_v30 }
  0x2b   : > { %615 = vmatpush.bf16.msra.mxu3 %v1198_v31  ;;  %330 = vmatmul.bf16.vlgmr.msra.gmra.mxu0 %v1172_v33 }
  0x2c   : > { %692 = vmatpush.bf16.msrb.mxu0 %v1213_v32  ;;  %412 = vmatmul.bf16.vlgmr.msra.gmra.mxu1 %v1172_v33 }
  0x2d   : > { %508 = vmatmul.bf16.vlgmr.msra.gmra.mxu2 %v1172_v33  ;;  %787 = vmatpush.bf16.msrb.mxu1 %v1221_v35 }
  0x2e   : > { %1227 = vmatpush.bf16.msrb.mxu2 %v1213_v32  ;;  %616 = vmatmul.bf16.vlgmr.msra.gmra.mxu3 %v1411_v34 }
  0x2f   : > { %1235 = vmatpush.bf16.msrb.mxu3 %v1221_v35 }
  0x30   : > { %693 = vmatpush.bf16.msrb.mxu0 %v1212_v36 }
  0x31   : > { %788 = vmatpush.bf16.msrb.mxu1 %v1220_v37 }
  0x32   : > { %1228 = vmatpush.bf16.msrb.mxu2 %v1212_v36 }
  0x33   : > { %1236 = vmatpush.bf16.msrb.mxu3 %v1220_v37 }
  0x34   : > { %694 = vmatpush.bf16.msrb.mxu0 %v1211_v38 }
  0x35   : > { %789 = vmatpush.bf16.msrb.mxu1 %v1219_v40 }
  0x36   : > { %1229 = vmatpush.bf16.msrb.mxu2 %v1211_v38 }
  0x37   : > { %1237 = vmatpush.bf16.msrb.mxu3 %v1219_v40  ;;  %v1252_v40 = vld [vmem:[%s1483_s4] ss:$0 sm:$0xff] }
  0x38   : > { %695 = vmatpush.bf16.msrb.mxu0 %v1210_v42 }
  0x39   : > { %790 = vmatpush.bf16.msrb.mxu1 %v1218_v45 }
  0x3a   : > { %1230 = vmatpush.bf16.msrb.mxu2 %v1210_v42 }
  0x3b   : > { %1238 = vmatpush.bf16.msrb.mxu3 %v1218_v45  ;;  %335 = vmatmul.bf16.gmra.mxu0 %v271_v47 }
  0x3c   : > { %696 = vmatpush.bf16.msrb.mxu0 %v1209_v46  ;;  %417 = vmatmul.bf16.gmra.mxu1 %v271_v47 }
  0x3d   : > { %513 = vmatmul.bf16.gmra.mxu2 %v271_v47  ;;  %791 = vmatpush.bf16.msrb.mxu1 %v1217_v49 }
  0x3e   : > { %1231 = vmatpush.bf16.msrb.mxu2 %v1209_v46  ;;  %621 = vmatmul.bf16.gmra.mxu3 %v557_v48 }
  0x3f   : > { %1239 = vmatpush.bf16.msrb.mxu3 %v1217_v49 }
  0x40   : > { %697 = vmatpush.bf16.msrb.mxu0 %v1208_v50 }
  0x41   : > { %792 = vmatpush.bf16.msrb.mxu1 %v1216_v51 }
  0x42   : > { %1232 = vmatpush.bf16.msrb.mxu2 %v1208_v50 }
  0x43   : > { %1240 = vmatpush.bf16.msrb.mxu3 %v1216_v51 }
  0x44   : > { %698 = vmatpush.bf16.msrb.mxu0 %v1207_v52 }
  0x45   : > { %793 = vmatpush.bf16.msrb.mxu1 %v1215_v53 }
  0x46   : > { %1233 = vmatpush.bf16.msrb.mxu2 %v1207_v52 }
  0x47   : > { %1241 = vmatpush.bf16.msrb.mxu3 %v1215_v53 }
  0x48   : > { %699 = vmatpush.bf16.msrb.mxu0 %v1206_v54 }
  0x49   : > { %794 = vmatpush.bf16.msrb.mxu1 %v1214_v55 }
  0x4a   : > { %1234 = vmatpush.bf16.msrb.mxu2 %v1206_v54 }
  0x4b   : > { %1242 = vmatpush.bf16.msrb.mxu3 %v1214_v55  ;;  %700 = vmatmul.bf16.vlgmr.msrb.gmra.mxu0 %v1411_v34 }
  0x4c   : > { %795 = vmatmul.bf16.vlgmr.msrb.gmra.mxu1 %v1411_v34 }
  0x4d   : > { %705 = vmatmul.bf16.vlgmr.msrb.gmra.mxu2 %v557_v48 }
  0x4e   : > { %800 = vmatmul.bf16.vlgmr.msrb.gmra.mxu3 %v557_v48 }
  0xa8   : > { %v331_v56 = vpop.f32.mrf.mxu0 }
  0xa9   : > { %v413_v57 = vpop.f32.mrf.mxu1 }
  0xaa   : > { %v426_v8 = vrot.slane %v413_v57, 1 }
  0xb0   : > { %v509_v58 = vpop.f32.mrf.mxu2  ;;  %v333_v60 = vpop.f32.mrf.mxu0 }
  0xb1   : > { %v617_v59 = vpop.f32.mrf.mxu3  ;;  %v415_v61 = vpop.f32.mrf.mxu1  ;;  %v522_v14 = vrot.slane %v509_v58, 2 }
  0xb2   : > { %v427_v6 = vrot.slane %v415_v61, 1 }
  0xb4   : > { %v428_v15 = vsel %vm425_vm0, %v426_v8, %v427_v6 }
  0xb5   : > { %v433_v20 = vadd.f32 %v428_v15, %v331_v56 }
  0xb8   : > { %v511_v62 = vpop.f32.mrf.mxu2  ;;  %v336_v0 = vpop.f32.mrf.mxu0 }
  0xb9   : > { %v619_v63 = vpop.f32.mrf.mxu3  ;;  %v418_v1 = vpop.f32.mrf.mxu1  ;;  %v523_v9 = vrot.slane %v511_v62, 2 }
  0xba   : > { %v429_v7 = vrot.slane %v418_v1, 1 }
  0xbb   : > { %v524_v18 = vsel %vm521_vm1, %v522_v14, %v523_v9 }
  0xbc   : > { %v430_v16 = vsel %vm425_vm0, %v427_v6, %v429_v7  ;;  %v529_v22 = vadd.f32 %v524_v18, %v433_v20 }
  0xbd   : > { %v434_v21 = vadd.f32 %v430_v16, %v333_v60 }
  0xbe   : > { %v625_v32 = vadd.f32 %v617_v59, %v529_v22 }
  0xc0   : > { %v514_v2 = vpop.f32.mrf.mxu2  ;;  %v337_v4 = vpop.f32.mrf.mxu0 }
  0xc1   : > { %v622_v3 = vpop.f32.mrf.mxu3  ;;  %v420_v5 = vpop.f32.mrf.mxu1  ;;  %v525_v10 = vrot.slane %v514_v2, 2 }
  0xc3   : > { %v526_v19 = vsel %vm521_vm1, %v523_v9, %v525_v10 }
  0xc4   : > { %v530_v23 = vadd.f32 %v526_v19, %v434_v21 }
  0xc6   : > { %v626_v33 = vadd.f32 %v619_v63, %v530_v23 }
  0xc8   : > { %v516_v11 = vpop.f32.mrf.mxu2  ;;  %v701_v13 = vpop.f32.mrf.mxu0 }
  0xc9   : > { %v623_v12 = vpop.f32.mrf.mxu3  ;;  %v796_v17 = vpop.f32.mrf.mxu1  ;;  %v713_v28 = vrot.slane %v701_v13, 1 }
  0xca   : > { %v808_v35 = vrot.slane %v796_v17, 2 }
  0xd0   : > { %v706_v24 = vpop.f32.mrf.mxu2  ;;  %v703_v27 = vpop.f32.mrf.mxu0 }
  0xd1   : > { %v716_v25 = vrot.slane %v706_v24, 1  ;;  %v801_v26 = vpop.f32.mrf.mxu3  ;;  %v714_v30 = vrot.slane %v703_v27, 1  ;;  %v798_v31 = vpop.f32.mrf.mxu1 }
  0xd2   : > { %v811_v29 = vrot.slane %v801_v26, 2  ;;  %v809_v34 = vrot.slane %v798_v31, 2 }
  0xd3   : > { %v715_v36 = vsel %vm425_vm0, %v713_v28, %v714_v30  ;;  %v717_v37 = vsel %vm425_vm0, %v714_v30, %v716_v25 }
  0xd4   : > { %v720_v38 = vadd.f32 %v715_v36, %v625_v32  ;;  %v721_v39 = vadd.f32 %v717_v37, %v626_v33  ;;  %v810_v41 = vsel %vm521_vm1, %v808_v35, %v809_v34  ;;  %v812_v42 = vsel %vm521_vm1, %v809_v34, %v811_v29 }
  0xd6   : > { %v815_v43 = vadd.f32 %v810_v41, %v720_v38  ;;  %v816_v44 = vadd.f32 %v812_v42, %v721_v39 }
  0xd8   : > { %v708_v45 = vpop.f32.mrf.mxu2  ;;  %v821_v46 = vadd.f32 %v1252_v40, %v815_v43  ;;  %v822_v47 = vadd.f32 %v1252_v40, %v816_v44 }
  0xd9   : > { %v803_v48 = vpop.f32.mrf.mxu3 }
  0xda   : > { %v823_v49 = vmax.f32 %v821_v46, 0.0  ;;  %v824_v50 = vmax.f32 %v822_v47, 0.0 }
  0xdc   : > { %v1225_v51 = vpack.c.bf16 %v824_v50, %v823_v49 }
  0xde   : > { %1226 = vst [vmem:[%s244_s11] sm:$0xff] %v1225_v51  }
  0xdf PF: > { %s15_s18 = sadd.s32 1, %s1259_s18  }
  0xe0   : > { %p12_p4 = scmp.ge.s32.totalorder %s15_s18, 4  }
  0xe2   :  { %14 = sbr.rel (!%p12_p4) target bundleno = 1 (0x1), region = 77 }

</bundles_post_ra>
